<compile_context>
chip_gen: v7x
topology: tpu7x:2x2x1
jax: 0.10.0
libtpu: 0.0.40
codegen_flags: <defaults>
</compile_context>

<pallas_src>
import functools

import jax
import jax.numpy as jnp
from jax.experimental import pallas as pl
from jax.experimental.pallas import tpu as pltpu

# ----------------------------- small synthetic config -----------------------------
NUM_CLASSES = 8          # module default
HIDDEN_DIM  = 64         # classifier hidden (module default 512; kept small here)
IMG_SIZE    = 16
PATCH       = 8
IN_CHANS    = 4
EMBED_DIM   = 32
DEPTH       = 2
NUM_HEADS   = 4
MLP_RATIO   = 4
LN_EPS      = 1e-6       # timm-style ViT eps (autoencoder norm_layer unknown)
LOGITS_PAD  = 128        # lane-dense logits store; sliced back to NUM_CLASSES outside


# ----------------------------------- helpers --------------------------------------
def _layernorm(z, w, b):
    mu = jnp.mean(z, axis=-1, keepdims=True)
    var = jnp.mean((z - mu) ** 2, axis=-1, keepdims=True)
    return (z - mu) * jax.lax.rsqrt(var + LN_EPS) * w + b


def _const_index(*_, ndim):
    # constant index_map: weight blocks are identical for every grid step
    return (0,) * ndim


# ------------------------------------ kernel ---------------------------------------
def fused_forward_kernel(
        patches_ref,                      # (n_pad, C*P*P)  this image's flat patches (f32)
        patch_w_ref,                      # (C*P*P, D)      bf16
        tok_add_ref,                      # (n_pad, D)      f32: cls / pos+bias / zeros rows
        ln1w_ref, ln1b_ref,               # (L, 1, D)       f32
        wqkv_ref, bqkv_ref,               # (L, D, 3D) bf16 (q cols pre-scaled), (L, 1, 3D) f32
        wo_ref, bo_ref,                   # (L, H, hd, D) bf16, (L, 1, D) f32
        ln2w_ref, ln2b_ref,               # (L, 1, D)       f32
        w1_ref, b1_ref,                   # (L, D, Hm) bf16, (L, 1, Hm) f32
        w2_ref, b2_ref,                   # (L, Hm, D) bf16, (L, 1, D)  f32
        nw_ref, nb_ref,                   # (1, D)          f32
        hw1_ref, hb1_ref,                 # (D, Hh) bf16, (1, Hh) f32
        hw2_ref, hb2_ref,                 # (Hh, LOGITS_PAD) bf16, (1, LOGITS_PAD) f32
        o_ref,                            # (n_pad, LOGITS_PAD) f32
        *, n_tok, num_heads, depth):
    n_pad = patches_ref.shape[0]
    D = patch_w_ref.shape[1]
    hd = D // num_heads

    # ---- patch embed + CLS / pos-embed / bias (batch-invariant rows added here) ----
    x = jnp.dot(patches_ref[...].astype(jnp.bfloat16), patch_w_ref[...],
                preferred_element_type=jnp.float32) + tok_add_ref[...]    # (n_pad, D) f32

    # key-padding bias: token positions >= n_tok are masked out as attention keys
    key_bias = jnp.where(
        jax.lax.broadcasted_iota(jnp.int32, (n_pad, n_pad), 1) < n_tok,
        0.0, -1e30).astype(jnp.float32)                                   # (n_pad, n_pad)

    # ---- transformer blocks (static loop is fine at DEPTH=2; switch to
    #      lax.fori_loop over stacked weights if depth grows) ----
    for l in range(depth):
        # --- multi-head self-attention (pre-norm), heads batched in one einsum ---
        h1 = _layernorm(x, ln1w_ref[l], ln1b_ref[l])
        qkv = jnp.dot(h1.astype(jnp.bfloat16), wqkv_ref[l],
                      preferred_element_type=jnp.float32) + bqkv_ref[l]   # (n_pad, 3D) f32
        # (n_pad, 3D) -> (3D, n_pad) [2D transpose] -> (3H, hd, n_pad) [tile-aligned
        # leading split] -> (3H, n_pad, hd) [batched last-two-dims transpose]; one cast.
        qkvh = jnp.transpose(qkv.T.reshape(3 * num_heads, hd, n_pad),
                             (0, 2, 1)).astype(jnp.bfloat16)              # (3H, n_pad, hd)
        q = qkvh[0:num_heads]                                             # (H, n_pad, hd)
        k = qkvh[num_heads:2 * num_heads]
        v = qkvh[2 * num_heads:3 * num_heads]

        # attention scale is pre-folded into the q columns of wqkv / bqkv (wrapper)
        s = jnp.einsum('hqd,hkd->hqk', q, k,
                       preferred_element_type=jnp.float32)                # (H, n_pad, n_pad)
        s = s + key_bias
        s = s - jnp.max(s, axis=-1, keepdims=True)
        p = jnp.exp(s)
        p = p * pl.reciprocal(jnp.sum(p, axis=-1, keepdims=True), approx=True)

        ctx = jnp.einsum('hqk,hkd->hqd', p.astype(jnp.bfloat16), v,
                         preferred_element_type=jnp.float32)              # (H, n_pad, hd)
        # fold heads through the (head-reshaped) output projection, then sum heads
        proj = jnp.einsum('hqd,hde->hqe', ctx.astype(jnp.bfloat16), wo_ref[l],
                          preferred_element_type=jnp.float32)             # (H, n_pad, D)
        x = x + jnp.sum(proj, axis=0) + bo_ref[l]

        # --- MLP (pre-norm) ---
        h2 = _layernorm(x, ln2w_ref[l], ln2b_ref[l])
        m = jnp.dot(h2.astype(jnp.bfloat16), w1_ref[l],
                    preferred_element_type=jnp.float32) + b1_ref[l]
        # TODO(synk): PyTorch nn.GELU() default is the exact erf form; tanh approx used.
        m = jax.nn.gelu(m, approximate=True)
        x = x + jnp.dot(m.astype(jnp.bfloat16), w2_ref[l],
                        preferred_element_type=jnp.float32) + b2_ref[l]

    # ---- final encoder LayerNorm + classifier (Linear->ReLU->Linear) on ALL rows.
    #      Row 0 is the CLS row; the wrapper slices it out (no in-kernel gather). ----
    z = _layernorm(x, nw_ref[...], nb_ref[...])
    hcls = jnp.maximum(jnp.dot(z.astype(jnp.bfloat16), hw1_ref[...],
                               preferred_element_type=jnp.float32) + hb1_ref[...], 0.0)
    logits = jnp.dot(hcls.astype(jnp.bfloat16), hw2_ref[...],
                     preferred_element_type=jnp.float32) + hb2_ref[...]   # (n_pad, 128)
    o_ref[...] = logits.astype(o_ref.dtype)


# ------------------------------------ forward --------------------------------------
@jax.jit
def masked_convit_forward(x, params):
    """x: NCHW float32 image batch -> logits [B, NUM_CLASSES]."""
    B, C, Himg, Wimg = x.shape
    nph, npw = Himg // PATCH, Wimg // PATCH
    num_patches = nph * npw
    n_tok = num_patches + 1
    n_pad = ((n_tok + 7) // 8) * 8            # pad token count to a sublane multiple
    CPP = C * PATCH * PATCH
    hd = EMBED_DIM // NUM_HEADS
    Hm = EMBED_DIM * MLP_RATIO

    # PatchEmbed front-end: non-overlapping conv == matmul on flattened patches.
    # TODO(synk): the 6-D transpose stays as (tiny) wrapper glue; doing it in-kernel
    # would force minor-dim reshapes/relayouts in Mosaic.
    patches = x.reshape(B, C, nph, PATCH, npw, PATCH)
    patches = patches.transpose(0, 2, 4, 1, 3, 5).reshape(B, num_patches, CPP)
    # row 0 = CLS slot, rows n_tok..n_pad-1 = zero padding
    patches_p = jnp.pad(patches, ((0, 0), (1, n_pad - n_tok), (0, 0)))
    patches_p = patches_p.reshape(B * n_pad, CPP)

    # per-token additive term (batch-invariant, passed once; broadcast in kernel):
    # CLS token+pos / pos+patch bias / zeros (padding)
    add_real = params["pos_embed"][0] + jnp.concatenate(
        [params["cls_token"][0],
         jnp.broadcast_to(params["patch_b"], (num_patches, EMBED_DIM))], axis=0)
    tok_add = jnp.pad(add_real, ((0, n_pad - n_tok), (0, 0)))              # (n_pad, D) f32

    blk = params["blocks"]
    # fold the attention scale (hd**-0.5) into the q columns of wqkv / bqkv
    qscale = jnp.concatenate([jnp.full((EMBED_DIM,), hd ** -0.5, jnp.float32),
                              jnp.ones((2 * EMBED_DIM,), jnp.float32)])
    wqkv = (blk["wqkv"].astype(jnp.float32) * qscale).astype(jnp.bfloat16)
    bqkv = blk["bqkv"] * qscale
    # head-reshaped output projection: (L, D, D) -> (L, H, hd, D)
    wo_heads = blk["wo"].reshape(DEPTH, NUM_HEADS, hd, EMBED_DIM)
    # lane-dense classifier head: pad logits dim to 128
    hw2p = jnp.pad(params["head_w2"], ((0, 0), (0, LOGITS_PAD - NUM_CLASSES)))
    hb2p = jnp.pad(params["head_b2"], ((0, 0), (0, LOGITS_PAD - NUM_CLASSES)))

    in_args = [patches_p, params["patch_w"], tok_add,
               blk["ln1_w"], blk["ln1_b"], wqkv, bqkv, wo_heads, blk["bo"],
               blk["ln2_w"], blk["ln2_b"], blk["w1"], blk["b1"], blk["w2"], blk["b2"],
               params["norm_w"], params["norm_b"],
               params["head_w1"], params["head_b1"], hw2p, hb2p]

    in_specs = [pl.BlockSpec((n_pad, CPP), lambda b: (b, 0))]              # per-image patches
    in_specs += [pl.BlockSpec(a.shape, functools.partial(_const_index, ndim=a.ndim))
                 for a in in_args[1:]]                                     # resident weights
    out_spec = pl.BlockSpec((n_pad, LOGITS_PAD), lambda b: (b, 0))

    # advisory cost estimate (helps XLA schedule the surrounding pad/transpose glue)
    flops_img = 2 * n_pad * CPP * EMBED_DIM
    flops_img += DEPTH * (
        2 * n_pad * EMBED_DIM * 3 * EMBED_DIM
        + 2 * 2 * NUM_HEADS * n_pad * n_pad * hd
        + 2 * NUM_HEADS * n_pad * hd * EMBED_DIM
        + 2 * 2 * n_pad * EMBED_DIM * Hm)
    flops_img += 2 * n_pad * EMBED_DIM * HIDDEN_DIM + 2 * n_pad * HIDDEN_DIM * LOGITS_PAD
    transc = B * DEPTH * (NUM_HEADS * n_pad * n_pad + n_pad * Hm)
    bytes_acc = sum(int(a.size) * a.dtype.itemsize for a in in_args) \
        + B * n_pad * LOGITS_PAD * 4
    cost = pl.CostEstimate(flops=int(B * flops_img), transcendentals=int(transc),
                           bytes_accessed=int(bytes_acc))

    kernel = functools.partial(
        fused_forward_kernel, n_tok=n_tok, num_heads=NUM_HEADS, depth=DEPTH)

    out = pl.pallas_call(
        kernel,
        out_shape=jax.ShapeDtypeStruct((B * n_pad, LOGITS_PAD), jnp.float32),
        grid=(B,),
        in_specs=in_specs,
        out_specs=out_spec,
        compiler_params=pltpu.CompilerParams(dimension_semantics=("parallel",)),
        cost_estimate=cost,
    )(*in_args)

    # row 0 of each image's token block is the CLS row; slice real classes back out
    return out.reshape(B, n_pad, LOGITS_PAD)[:, 0, :NUM_CLASSES]


# ------------------------------------ params ---------------------------------------
def init_params(key):
    keys = iter(jax.random.split(key, 32))

    def nrm(shape, dtype=jnp.float32, scale=0.02):
        return (scale * jax.random.normal(next(keys), shape, dtype=jnp.float32)
                ).astype(dtype)

    N = (IMG_SIZE // PATCH) ** 2 + 1
    mlp_hidden = EMBED_DIM * MLP_RATIO
    L = DEPTH
    bf16 = jnp.bfloat16

    blocks = {   # per-layer weights stacked along a leading layer axis; MXU weights bf16
        "ln1_w": jnp.ones((L, 1, EMBED_DIM), jnp.float32),
        "ln1_b": jnp.zeros((L, 1, EMBED_DIM), jnp.float32),
        "wqkv":  nrm((L, EMBED_DIM, 3 * EMBED_DIM), bf16),
        "bqkv":  jnp.zeros((L, 1, 3 * EMBED_DIM), jnp.float32),
        "wo":    nrm((L, EMBED_DIM, EMBED_DIM), bf16),
        "bo":    jnp.zeros((L, 1, EMBED_DIM), jnp.float32),
        "ln2_w": jnp.ones((L, 1, EMBED_DIM), jnp.float32),
        "ln2_b": jnp.zeros((L, 1, EMBED_DIM), jnp.float32),
        "w1":    nrm((L, EMBED_DIM, mlp_hidden), bf16),
        "b1":    jnp.zeros((L, 1, mlp_hidden), jnp.float32),
        "w2":    nrm((L, mlp_hidden, EMBED_DIM), bf16),
        "b2":    jnp.zeros((L, 1, EMBED_DIM), jnp.float32),
    }
    return {
        "patch_w": nrm((IN_CHANS * PATCH * PATCH, EMBED_DIM), bf16),
        "patch_b": jnp.zeros((1, EMBED_DIM), jnp.float32),
        "cls_token": nrm((1, 1, EMBED_DIM)),
        "pos_embed": nrm((1, N, EMBED_DIM)),
        "blocks": blocks,
        "norm_w": jnp.ones((1, EMBED_DIM), jnp.float32),
        "norm_b": jnp.zeros((1, EMBED_DIM), jnp.float32),
        "head_w1": nrm((EMBED_DIM, HIDDEN_DIM), bf16),
        "head_b1": jnp.zeros((1, HIDDEN_DIM), jnp.float32),
        "head_w2": nrm((HIDDEN_DIM, NUM_CLASSES), bf16),
        "head_b2": jnp.zeros((1, NUM_CLASSES), jnp.float32),
    }


# ------------------------------------- main -----------------------------------------
if __name__ == "__main__":
    key = jax.random.PRNGKey(0)
    kx, kp = jax.random.split(key)
    x = jax.random.normal(kx, (2, IN_CHANS, IMG_SIZE, IMG_SIZE), dtype=jnp.float32)
    params = init_params(kp)

    logits = masked_convit_forward(x, params)
    logits = jax.block_until_ready(logits)

    assert logits.shape == (2, NUM_CLASSES), logits.shape
    assert logits.dtype == jnp.float32
    assert bool(jnp.all(jnp.isfinite(logits)))
    print("KERNEL_OK")
</pallas_src>

<mosaic_0001>
module attributes {stable_mosaic.version = 11 : i64} {
  func.func @fused_forward_kernel(%arg0: i32, %arg1: memref<8x256xf32, #tpu.memory_space<vmem>>, %arg2: memref<256x32xbf16, #tpu.memory_space<vmem>>, %arg3: memref<8x32xf32, #tpu.memory_space<vmem>>, %arg4: memref<2x1x32xf32, #tpu.memory_space<vmem>>, %arg5: memref<2x1x32xf32, #tpu.memory_space<vmem>>, %arg6: memref<2x32x96xbf16, #tpu.memory_space<vmem>>, %arg7: memref<2x1x96xf32, #tpu.memory_space<vmem>>, %arg8: memref<2x4x8x32xbf16, #tpu.memory_space<vmem>>, %arg9: memref<2x1x32xf32, #tpu.memory_space<vmem>>, %arg10: memref<2x1x32xf32, #tpu.memory_space<vmem>>, %arg11: memref<2x1x32xf32, #tpu.memory_space<vmem>>, %arg12: memref<2x32x128xbf16, #tpu.memory_space<vmem>>, %arg13: memref<2x1x128xf32, #tpu.memory_space<vmem>>, %arg14: memref<2x128x32xbf16, #tpu.memory_space<vmem>>, %arg15: memref<2x1x32xf32, #tpu.memory_space<vmem>>, %arg16: memref<1x32xf32, #tpu.memory_space<vmem>>, %arg17: memref<1x32xf32, #tpu.memory_space<vmem>>, %arg18: memref<32x64xbf16, #tpu.memory_space<vmem>>, %arg19: memref<1x64xf32, #tpu.memory_space<vmem>>, %arg20: memref<64x128xbf16, #tpu.memory_space<vmem>>, %arg21: memref<1x128xf32, #tpu.memory_space<vmem>>, %arg22: memref<8x128xf32, #tpu.memory_space<vmem>>) attributes {dimension_semantics = [#tpu.dimension_semantics<parallel>], iteration_bounds = array<i64: 2>, scalar_prefetch = 0 : i64, scratch_operands = 0 : i64, tpu.core_type = #tpu.core_type<tc>, window_params = [{transform_indices = @transform_0, window_bounds = array<i64: 8, 256>}, {pipeline_mode = #tpu.pipeline_mode<synchronous>, transform_indices = @transform_1, window_bounds = array<i64: 256, 32>}, {pipeline_mode = #tpu.pipeline_mode<synchronous>, transform_indices = @transform_2, window_bounds = array<i64: 8, 32>}, {pipeline_mode = #tpu.pipeline_mode<synchronous>, transform_indices = @transform_3, window_bounds = array<i64: 2, 1, 32>}, {pipeline_mode = #tpu.pipeline_mode<synchronous>, transform_indices = @transform_4, window_bounds = array<i64: 2, 1, 32>}, {pipeline_mode = #tpu.pipeline_mode<synchronous>, transform_indices = @transform_5, window_bounds = array<i64: 2, 32, 96>}, {pipeline_mode = #tpu.pipeline_mode<synchronous>, transform_indices = @transform_6, window_bounds = array<i64: 2, 1, 96>}, {pipeline_mode = #tpu.pipeline_mode<synchronous>, transform_indices = @transform_7, window_bounds = array<i64: 2, 4, 8, 32>}, {pipeline_mode = #tpu.pipeline_mode<synchronous>, transform_indices = @transform_8, window_bounds = array<i64: 2, 1, 32>}, {pipeline_mode = #tpu.pipeline_mode<synchronous>, transform_indices = @transform_9, window_bounds = array<i64: 2, 1, 32>}, {pipeline_mode = #tpu.pipeline_mode<synchronous>, transform_indices = @transform_10, window_bounds = array<i64: 2, 1, 32>}, {pipeline_mode = #tpu.pipeline_mode<synchronous>, transform_indices = @transform_11, window_bounds = array<i64: 2, 32, 128>}, {pipeline_mode = #tpu.pipeline_mode<synchronous>, transform_indices = @transform_12, window_bounds = array<i64: 2, 1, 128>}, {pipeline_mode = #tpu.pipeline_mode<synchronous>, transform_indices = @transform_13, window_bounds = array<i64: 2, 128, 32>}, {pipeline_mode = #tpu.pipeline_mode<synchronous>, transform_indices = @transform_14, window_bounds = array<i64: 2, 1, 32>}, {pipeline_mode = #tpu.pipeline_mode<synchronous>, transform_indices = @transform_15, window_bounds = array<i64: 1, 32>}, {pipeline_mode = #tpu.pipeline_mode<synchronous>, transform_indices = @transform_16, window_bounds = array<i64: 1, 32>}, {pipeline_mode = #tpu.pipeline_mode<synchronous>, transform_indices = @transform_17, window_bounds = array<i64: 32, 64>}, {pipeline_mode = #tpu.pipeline_mode<synchronous>, transform_indices = @transform_18, window_bounds = array<i64: 1, 64>}, {pipeline_mode = #tpu.pipeline_mode<synchronous>, transform_indices = @transform_19, window_bounds = array<i64: 64, 128>}, {pipeline_mode = #tpu.pipeline_mode<synchronous>, transform_indices = @transform_20, window_bounds = array<i64: 1, 128>}, {transform_indices = @transform_21, window_bounds = array<i64: 8, 128>}]} {
    %c0 = arith.constant 0 : index
    %c0_0 = arith.constant 0 : index
    %0 = vector.load %arg1[%c0, %c0_0] : memref<8x256xf32, #tpu.memory_space<vmem>>, vector<8x256xf32>
    %1 = arith.truncf %0 : vector<8x256xf32> to vector<8x256xbf16>
    %c0_1 = arith.constant 0 : index
    %c0_2 = arith.constant 0 : index
    %2 = vector.load %arg2[%c0_1, %c0_2] : memref<256x32xbf16, #tpu.memory_space<vmem>>, vector<256x32xbf16>
    %cst = arith.constant dense<0.000000e+00> : vector<8x32xf32>
    %3 = tpu.matmul %1, %2, %cst {dimension_numbers = #tpu.dot_dimension_numbers<[1], [0], [0], [1], [0, 0, 1, 1], [], []>} : vector<8x256xbf16>, vector<256x32xbf16>, vector<8x32xf32> -> vector<8x32xf32>
    %c0_3 = arith.constant 0 : index
    %c0_4 = arith.constant 0 : index
    %4 = vector.load %arg3[%c0_3, %c0_4] : memref<8x32xf32, #tpu.memory_space<vmem>>, vector<8x32xf32>
    %5 = arith.addf %3, %4 : vector<8x32xf32>
    %6 = tpu.iota {dimensions = array<i32: 1>} : vector<8x8xi32>
    %c5_i32 = arith.constant 5 : i32
    %7 = vector.broadcast %c5_i32 : i32 to vector<8x8xi32>
    %8 = arith.cmpi slt, %6, %7 : vector<8x8xi32>
    %cst_5 = arith.constant 0.000000e+00 : f32
    %cst_6 = arith.constant -1.000000e+30 : f32
    %9 = vector.broadcast %cst_5 : f32 to vector<8x8xf32>
    %10 = vector.broadcast %cst_6 : f32 to vector<8x8xf32>
    %11 = arith.select %8, %9, %10 : vector<8x8xi1>, vector<8x8xf32>
    %c0_7 = arith.constant 0 : index
    %c0_8 = arith.constant 0 : index
    %c0_9 = arith.constant 0 : index
    %12 = vector.load %arg4[%c0_7, %c0_8, %c0_9] : memref<2x1x32xf32, #tpu.memory_space<vmem>>, vector<1x1x32xf32>
    %13 = vector.shape_cast %12 : vector<1x1x32xf32> to vector<1x32xf32>
    %c0_10 = arith.constant 0 : index
    %c0_11 = arith.constant 0 : index
    %c0_12 = arith.constant 0 : index
    %14 = vector.load %arg5[%c0_10, %c0_11, %c0_12] : memref<2x1x32xf32, #tpu.memory_space<vmem>>, vector<1x1x32xf32>
    %15 = vector.shape_cast %14 : vector<1x1x32xf32> to vector<1x32xf32>
    %cst_13 = arith.constant dense<0.000000e+00> : vector<8xf32>
    %16 = vector.multi_reduction <add>, %5, %cst_13 [1] : vector<8x32xf32> to vector<8xf32>
    %17 = vector.shape_cast %16 : vector<8xf32> to vector<8x1xf32>
    %cst_14 = arith.constant 3.200000e+01 : f32
    %18 = vector.broadcast %cst_14 : f32 to vector<8x1xf32>
    %19 = arith.divf %17, %18 : vector<8x1xf32>
    %20 = vector.broadcast %19 : vector<8x1xf32> to vector<8x32xf32>
    %21 = arith.subf %5, %20 : vector<8x32xf32>
    %22 = arith.mulf %21, %21 : vector<8x32xf32>
    %cst_15 = arith.constant dense<0.000000e+00> : vector<8xf32>
    %23 = vector.multi_reduction <add>, %22, %cst_15 [1] : vector<8x32xf32> to vector<8xf32>
    %24 = vector.shape_cast %23 : vector<8xf32> to vector<8x1xf32>
    %cst_16 = arith.constant 3.200000e+01 : f32
    %25 = vector.broadcast %cst_16 : f32 to vector<8x1xf32>
    %26 = arith.divf %24, %25 : vector<8x1xf32>
    %27 = vector.broadcast %19 : vector<8x1xf32> to vector<8x32xf32>
    %28 = arith.subf %5, %27 : vector<8x32xf32>
    %cst_17 = arith.constant 9.99999997E-7 : f32
    %29 = vector.broadcast %cst_17 : f32 to vector<8x1xf32>
    %30 = arith.addf %26, %29 : vector<8x1xf32>
    %31 = math.rsqrt %30 : vector<8x1xf32>
    %32 = vector.broadcast %31 : vector<8x1xf32> to vector<8x32xf32>
    %33 = arith.mulf %28, %32 : vector<8x32xf32>
    %34 = vector.broadcast %13 : vector<1x32xf32> to vector<8x32xf32>
    %35 = arith.mulf %33, %34 : vector<8x32xf32>
    %36 = vector.broadcast %15 : vector<1x32xf32> to vector<8x32xf32>
    %37 = arith.addf %35, %36 : vector<8x32xf32>
    %38 = arith.truncf %37 : vector<8x32xf32> to vector<8x32xbf16>
    %c0_18 = arith.constant 0 : index
    %c0_19 = arith.constant 0 : index
    %c0_20 = arith.constant 0 : index
    %39 = vector.load %arg6[%c0_18, %c0_19, %c0_20] : memref<2x32x96xbf16, #tpu.memory_space<vmem>>, vector<1x32x96xbf16>
    %40 = vector.shape_cast %39 : vector<1x32x96xbf16> to vector<32x96xbf16>
    %cst_21 = arith.constant dense<0.000000e+00> : vector<8x96xf32>
    %41 = tpu.matmul %38, %40, %cst_21 {dimension_numbers = #tpu.dot_dimension_numbers<[1], [0], [0], [1], [0, 0, 1, 1], [], []>} : vector<8x32xbf16>, vector<32x96xbf16>, vector<8x96xf32> -> vector<8x96xf32>
    %c0_22 = arith.constant 0 : index
    %c0_23 = arith.constant 0 : index
    %c0_24 = arith.constant 0 : index
    %42 = vector.load %arg7[%c0_22, %c0_23, %c0_24] : memref<2x1x96xf32, #tpu.memory_space<vmem>>, vector<1x1x96xf32>
    %43 = vector.shape_cast %42 : vector<1x1x96xf32> to vector<1x96xf32>
    %44 = vector.broadcast %43 : vector<1x96xf32> to vector<8x96xf32>
    %45 = arith.addf %41, %44 : vector<8x96xf32>
    %46 = tpu.transpose %45, [1, 0] : vector<8x96xf32> -> vector<96x8xf32>
    %47 = vector.shape_cast %46 : vector<96x8xf32> to vector<12x8x8xf32>
    %48 = tpu.transpose %47, [0, 2, 1] : vector<12x8x8xf32> -> vector<12x8x8xf32>
    %49 = arith.truncf %48 : vector<12x8x8xf32> to vector<12x8x8xbf16>
    %50 = vector.extract_strided_slice %49 {offsets = [0, 0, 0], sizes = [4, 8, 8], strides = [1, 1, 1]} : vector<12x8x8xbf16> to vector<4x8x8xbf16>
    %51 = vector.extract_strided_slice %49 {offsets = [4, 0, 0], sizes = [4, 8, 8], strides = [1, 1, 1]} : vector<12x8x8xbf16> to vector<4x8x8xbf16>
    %52 = vector.extract_strided_slice %49 {offsets = [8, 0, 0], sizes = [4, 8, 8], strides = [1, 1, 1]} : vector<12x8x8xbf16> to vector<4x8x8xbf16>
    "tpu.trace_start"() <{level = 10 : i32, message = "hqd,hkd->hqk"}> : () -> ()
    %cst_25 = arith.constant dense<0.000000e+00> : vector<4x8x8xf32>
    %53 = tpu.matmul %50, %51, %cst_25 {dimension_numbers = #tpu.dot_dimension_numbers<[2], [2], [1], [1], [0, 0, 0, 1, 1, 1], [0], [0]>} : vector<4x8x8xbf16>, vector<4x8x8xbf16>, vector<4x8x8xf32> -> vector<4x8x8xf32>
    "tpu.trace_stop"() : () -> ()
    %54 = vector.shape_cast %11 : vector<8x8xf32> to vector<1x8x8xf32>
    %55 = vector.broadcast %54 : vector<1x8x8xf32> to vector<4x8x8xf32>
    %56 = arith.addf %53, %55 : vector<4x8x8xf32>
    %cst_26 = arith.constant dense<0xFF800000> : vector<4x8xf32>
    %57 = vector.multi_reduction <maximumf>, %56, %cst_26 [2] : vector<4x8x8xf32> to vector<4x8xf32>
    %58 = vector.shape_cast %57 : vector<4x8xf32> to vector<4x8x1xf32>
    %59 = vector.broadcast %58 : vector<4x8x1xf32> to vector<4x8x8xf32>
    %60 = arith.subf %56, %59 : vector<4x8x8xf32>
    %61 = math.exp %60 : vector<4x8x8xf32>
    %cst_27 = arith.constant dense<0.000000e+00> : vector<4x8xf32>
    %62 = vector.multi_reduction <add>, %61, %cst_27 [2] : vector<4x8x8xf32> to vector<4x8xf32>
    %63 = vector.shape_cast %62 : vector<4x8xf32> to vector<4x8x1xf32>
    %64 = tpu.reciprocal %63 {approx = true} : vector<4x8x1xf32> -> vector<4x8x1xf32>
    %65 = vector.broadcast %64 : vector<4x8x1xf32> to vector<4x8x8xf32>
    %66 = arith.mulf %61, %65 : vector<4x8x8xf32>
    %67 = arith.truncf %66 : vector<4x8x8xf32> to vector<4x8x8xbf16>
    "tpu.trace_start"() <{level = 10 : i32, message = "hqk,hkd->hqd"}> : () -> ()
    %cst_28 = arith.constant dense<0.000000e+00> : vector<4x8x8xf32>
    %68 = tpu.matmul %67, %52, %cst_28 {dimension_numbers = #tpu.dot_dimension_numbers<[2], [1], [1], [2], [0, 0, 0, 1, 1, 2], [0], [0]>} : vector<4x8x8xbf16>, vector<4x8x8xbf16>, vector<4x8x8xf32> -> vector<4x8x8xf32>
    "tpu.trace_stop"() : () -> ()
    %69 = arith.truncf %68 : vector<4x8x8xf32> to vector<4x8x8xbf16>
    %c0_29 = arith.constant 0 : index
    %c0_30 = arith.constant 0 : index
    %c0_31 = arith.constant 0 : index
    %c0_32 = arith.constant 0 : index
    %70 = vector.load %arg8[%c0_29, %c0_30, %c0_31, %c0_32] : memref<2x4x8x32xbf16, #tpu.memory_space<vmem>>, vector<1x4x8x32xbf16>
    %71 = vector.shape_cast %70 : vector<1x4x8x32xbf16> to vector<4x8x32xbf16>
    "tpu.trace_start"() <{level = 10 : i32, message = "hqd,hde->hqe"}> : () -> ()
    %cst_33 = arith.constant dense<0.000000e+00> : vector<4x8x32xf32>
    %72 = tpu.matmul %69, %71, %cst_33 {dimension_numbers = #tpu.dot_dimension_numbers<[2], [1], [1], [2], [0, 0, 0, 1, 1, 2], [0], [0]>} : vector<4x8x8xbf16>, vector<4x8x32xbf16>, vector<4x8x32xf32> -> vector<4x8x32xf32>
    "tpu.trace_stop"() : () -> ()
    %cst_34 = arith.constant dense<0.000000e+00> : vector<8x32xf32>
    %73 = vector.multi_reduction <add>, %72, %cst_34 [0] : vector<4x8x32xf32> to vector<8x32xf32>
    %74 = arith.addf %5, %73 : vector<8x32xf32>
    %c0_35 = arith.constant 0 : index
    %c0_36 = arith.constant 0 : index
    %c0_37 = arith.constant 0 : index
    %75 = vector.load %arg9[%c0_35, %c0_36, %c0_37] : memref<2x1x32xf32, #tpu.memory_space<vmem>>, vector<1x1x32xf32>
    %76 = vector.shape_cast %75 : vector<1x1x32xf32> to vector<1x32xf32>
    %77 = vector.broadcast %76 : vector<1x32xf32> to vector<8x32xf32>
    %78 = arith.addf %74, %77 : vector<8x32xf32>
    %c0_38 = arith.constant 0 : index
    %c0_39 = arith.constant 0 : index
    %c0_40 = arith.constant 0 : index
    %79 = vector.load %arg10[%c0_38, %c0_39, %c0_40] : memref<2x1x32xf32, #tpu.memory_space<vmem>>, vector<1x1x32xf32>
    %80 = vector.shape_cast %79 : vector<1x1x32xf32> to vector<1x32xf32>
    %c0_41 = arith.constant 0 : index
    %c0_42 = arith.constant 0 : index
    %c0_43 = arith.constant 0 : index
    %81 = vector.load %arg11[%c0_41, %c0_42, %c0_43] : memref<2x1x32xf32, #tpu.memory_space<vmem>>, vector<1x1x32xf32>
    %82 = vector.shape_cast %81 : vector<1x1x32xf32> to vector<1x32xf32>
    %cst_44 = arith.constant dense<0.000000e+00> : vector<8xf32>
    %83 = vector.multi_reduction <add>, %78, %cst_44 [1] : vector<8x32xf32> to vector<8xf32>
    %84 = vector.shape_cast %83 : vector<8xf32> to vector<8x1xf32>
    %cst_45 = arith.constant 3.200000e+01 : f32
    %85 = vector.broadcast %cst_45 : f32 to vector<8x1xf32>
    %86 = arith.divf %84, %85 : vector<8x1xf32>
    %87 = vector.broadcast %86 : vector<8x1xf32> to vector<8x32xf32>
    %88 = arith.subf %78, %87 : vector<8x32xf32>
    %89 = arith.mulf %88, %88 : vector<8x32xf32>
    %cst_46 = arith.constant dense<0.000000e+00> : vector<8xf32>
    %90 = vector.multi_reduction <add>, %89, %cst_46 [1] : vector<8x32xf32> to vector<8xf32>
    %91 = vector.shape_cast %90 : vector<8xf32> to vector<8x1xf32>
    %cst_47 = arith.constant 3.200000e+01 : f32
    %92 = vector.broadcast %cst_47 : f32 to vector<8x1xf32>
    %93 = arith.divf %91, %92 : vector<8x1xf32>
    %94 = vector.broadcast %86 : vector<8x1xf32> to vector<8x32xf32>
    %95 = arith.subf %78, %94 : vector<8x32xf32>
    %cst_48 = arith.constant 9.99999997E-7 : f32
    %96 = vector.broadcast %cst_48 : f32 to vector<8x1xf32>
    %97 = arith.addf %93, %96 : vector<8x1xf32>
    %98 = math.rsqrt %97 : vector<8x1xf32>
    %99 = vector.broadcast %98 : vector<8x1xf32> to vector<8x32xf32>
    %100 = arith.mulf %95, %99 : vector<8x32xf32>
    %101 = vector.broadcast %80 : vector<1x32xf32> to vector<8x32xf32>
    %102 = arith.mulf %100, %101 : vector<8x32xf32>
    %103 = vector.broadcast %82 : vector<1x32xf32> to vector<8x32xf32>
    %104 = arith.addf %102, %103 : vector<8x32xf32>
    %105 = arith.truncf %104 : vector<8x32xf32> to vector<8x32xbf16>
    %c0_49 = arith.constant 0 : index
    %c0_50 = arith.constant 0 : index
    %c0_51 = arith.constant 0 : index
    %106 = vector.load %arg12[%c0_49, %c0_50, %c0_51] : memref<2x32x128xbf16, #tpu.memory_space<vmem>>, vector<1x32x128xbf16>
    %107 = vector.shape_cast %106 : vector<1x32x128xbf16> to vector<32x128xbf16>
    %cst_52 = arith.constant dense<0.000000e+00> : vector<8x128xf32>
    %108 = tpu.matmul %105, %107, %cst_52 {dimension_numbers = #tpu.dot_dimension_numbers<[1], [0], [0], [1], [0, 0, 1, 1], [], []>} : vector<8x32xbf16>, vector<32x128xbf16>, vector<8x128xf32> -> vector<8x128xf32>
    %c0_53 = arith.constant 0 : index
    %c0_54 = arith.constant 0 : index
    %c0_55 = arith.constant 0 : index
    %109 = vector.load %arg13[%c0_53, %c0_54, %c0_55] : memref<2x1x128xf32, #tpu.memory_space<vmem>>, vector<1x1x128xf32>
    %110 = vector.shape_cast %109 : vector<1x1x128xf32> to vector<1x128xf32>
    %111 = vector.broadcast %110 : vector<1x128xf32> to vector<8x128xf32>
    %112 = arith.addf %108, %111 : vector<8x128xf32>
    %113 = arith.mulf %112, %112 : vector<8x128xf32>
    %114 = arith.mulf %112, %113 : vector<8x128xf32>
    %cst_56 = arith.constant 4.471500e-02 : f32
    %115 = vector.broadcast %cst_56 : f32 to vector<8x128xf32>
    %116 = arith.mulf %115, %114 : vector<8x128xf32>
    %117 = arith.addf %112, %116 : vector<8x128xf32>
    %cst_57 = arith.constant 0.797884583 : f32
    %118 = vector.broadcast %cst_57 : f32 to vector<8x128xf32>
    %119 = arith.mulf %118, %117 : vector<8x128xf32>
    %120 = math.tanh %119 : vector<8x128xf32>
    %cst_58 = arith.constant 1.000000e+00 : f32
    %121 = vector.broadcast %cst_58 : f32 to vector<8x128xf32>
    %122 = arith.addf %121, %120 : vector<8x128xf32>
    %cst_59 = arith.constant 5.000000e-01 : f32
    %123 = vector.broadcast %cst_59 : f32 to vector<8x128xf32>
    %124 = arith.mulf %123, %122 : vector<8x128xf32>
    %125 = arith.mulf %112, %124 : vector<8x128xf32>
    %126 = arith.truncf %125 : vector<8x128xf32> to vector<8x128xbf16>
    %c0_60 = arith.constant 0 : index
    %c0_61 = arith.constant 0 : index
    %c0_62 = arith.constant 0 : index
    %127 = vector.load %arg14[%c0_60, %c0_61, %c0_62] : memref<2x128x32xbf16, #tpu.memory_space<vmem>>, vector<1x128x32xbf16>
    %128 = vector.shape_cast %127 : vector<1x128x32xbf16> to vector<128x32xbf16>
    %cst_63 = arith.constant dense<0.000000e+00> : vector<8x32xf32>
    %129 = tpu.matmul %126, %128, %cst_63 {dimension_numbers = #tpu.dot_dimension_numbers<[1], [0], [0], [1], [0, 0, 1, 1], [], []>} : vector<8x128xbf16>, vector<128x32xbf16>, vector<8x32xf32> -> vector<8x32xf32>
    %130 = arith.addf %78, %129 : vector<8x32xf32>
    %c0_64 = arith.constant 0 : index
    %c0_65 = arith.constant 0 : index
    %c0_66 = arith.constant 0 : index
    %131 = vector.load %arg15[%c0_64, %c0_65, %c0_66] : memref<2x1x32xf32, #tpu.memory_space<vmem>>, vector<1x1x32xf32>
    %132 = vector.shape_cast %131 : vector<1x1x32xf32> to vector<1x32xf32>
    %133 = vector.broadcast %132 : vector<1x32xf32> to vector<8x32xf32>
    %134 = arith.addf %130, %133 : vector<8x32xf32>
    %c1 = arith.constant 1 : index
    %c0_67 = arith.constant 0 : index
    %c0_68 = arith.constant 0 : index
    %135 = vector.load %arg4[%c1, %c0_67, %c0_68] : memref<2x1x32xf32, #tpu.memory_space<vmem>>, vector<1x1x32xf32>
    %136 = vector.shape_cast %135 : vector<1x1x32xf32> to vector<1x32xf32>
    %c1_69 = arith.constant 1 : index
    %c0_70 = arith.constant 0 : index
    %c0_71 = arith.constant 0 : index
    %137 = vector.load %arg5[%c1_69, %c0_70, %c0_71] : memref<2x1x32xf32, #tpu.memory_space<vmem>>, vector<1x1x32xf32>
    %138 = vector.shape_cast %137 : vector<1x1x32xf32> to vector<1x32xf32>
    %cst_72 = arith.constant dense<0.000000e+00> : vector<8xf32>
    %139 = vector.multi_reduction <add>, %134, %cst_72 [1] : vector<8x32xf32> to vector<8xf32>
    %140 = vector.shape_cast %139 : vector<8xf32> to vector<8x1xf32>
    %cst_73 = arith.constant 3.200000e+01 : f32
    %141 = vector.broadcast %cst_73 : f32 to vector<8x1xf32>
    %142 = arith.divf %140, %141 : vector<8x1xf32>
    %143 = vector.broadcast %142 : vector<8x1xf32> to vector<8x32xf32>
    %144 = arith.subf %134, %143 : vector<8x32xf32>
    %145 = arith.mulf %144, %144 : vector<8x32xf32>
    %cst_74 = arith.constant dense<0.000000e+00> : vector<8xf32>
    %146 = vector.multi_reduction <add>, %145, %cst_74 [1] : vector<8x32xf32> to vector<8xf32>
    %147 = vector.shape_cast %146 : vector<8xf32> to vector<8x1xf32>
    %cst_75 = arith.constant 3.200000e+01 : f32
    %148 = vector.broadcast %cst_75 : f32 to vector<8x1xf32>
    %149 = arith.divf %147, %148 : vector<8x1xf32>
    %150 = vector.broadcast %142 : vector<8x1xf32> to vector<8x32xf32>
    %151 = arith.subf %134, %150 : vector<8x32xf32>
    %cst_76 = arith.constant 9.99999997E-7 : f32
    %152 = vector.broadcast %cst_76 : f32 to vector<8x1xf32>
    %153 = arith.addf %149, %152 : vector<8x1xf32>
    %154 = math.rsqrt %153 : vector<8x1xf32>
    %155 = vector.broadcast %154 : vector<8x1xf32> to vector<8x32xf32>
    %156 = arith.mulf %151, %155 : vector<8x32xf32>
    %157 = vector.broadcast %136 : vector<1x32xf32> to vector<8x32xf32>
    %158 = arith.mulf %156, %157 : vector<8x32xf32>
    %159 = vector.broadcast %138 : vector<1x32xf32> to vector<8x32xf32>
    %160 = arith.addf %158, %159 : vector<8x32xf32>
    %161 = arith.truncf %160 : vector<8x32xf32> to vector<8x32xbf16>
    %c1_77 = arith.constant 1 : index
    %c0_78 = arith.constant 0 : index
    %c0_79 = arith.constant 0 : index
    %162 = vector.load %arg6[%c1_77, %c0_78, %c0_79] : memref<2x32x96xbf16, #tpu.memory_space<vmem>>, vector<1x32x96xbf16>
    %163 = vector.shape_cast %162 : vector<1x32x96xbf16> to vector<32x96xbf16>
    %cst_80 = arith.constant dense<0.000000e+00> : vector<8x96xf32>
    %164 = tpu.matmul %161, %163, %cst_80 {dimension_numbers = #tpu.dot_dimension_numbers<[1], [0], [0], [1], [0, 0, 1, 1], [], []>} : vector<8x32xbf16>, vector<32x96xbf16>, vector<8x96xf32> -> vector<8x96xf32>
    %c1_81 = arith.constant 1 : index
    %c0_82 = arith.constant 0 : index
    %c0_83 = arith.constant 0 : index
    %165 = vector.load %arg7[%c1_81, %c0_82, %c0_83] : memref<2x1x96xf32, #tpu.memory_space<vmem>>, vector<1x1x96xf32>
    %166 = vector.shape_cast %165 : vector<1x1x96xf32> to vector<1x96xf32>
    %167 = vector.broadcast %166 : vector<1x96xf32> to vector<8x96xf32>
    %168 = arith.addf %164, %167 : vector<8x96xf32>
    %169 = tpu.transpose %168, [1, 0] : vector<8x96xf32> -> vector<96x8xf32>
    %170 = vector.shape_cast %169 : vector<96x8xf32> to vector<12x8x8xf32>
    %171 = tpu.transpose %170, [0, 2, 1] : vector<12x8x8xf32> -> vector<12x8x8xf32>
    %172 = arith.truncf %171 : vector<12x8x8xf32> to vector<12x8x8xbf16>
    %173 = vector.extract_strided_slice %172 {offsets = [0, 0, 0], sizes = [4, 8, 8], strides = [1, 1, 1]} : vector<12x8x8xbf16> to vector<4x8x8xbf16>
    %174 = vector.extract_strided_slice %172 {offsets = [4, 0, 0], sizes = [4, 8, 8], strides = [1, 1, 1]} : vector<12x8x8xbf16> to vector<4x8x8xbf16>
    %175 = vector.extract_strided_slice %172 {offsets = [8, 0, 0], sizes = [4, 8, 8], strides = [1, 1, 1]} : vector<12x8x8xbf16> to vector<4x8x8xbf16>
    "tpu.trace_start"() <{level = 10 : i32, message = "hqd,hkd->hqk"}> : () -> ()
    %cst_84 = arith.constant dense<0.000000e+00> : vector<4x8x8xf32>
    %176 = tpu.matmul %173, %174, %cst_84 {dimension_numbers = #tpu.dot_dimension_numbers<[2], [2], [1], [1], [0, 0, 0, 1, 1, 1], [0], [0]>} : vector<4x8x8xbf16>, vector<4x8x8xbf16>, vector<4x8x8xf32> -> vector<4x8x8xf32>
    "tpu.trace_stop"() : () -> ()
    %177 = vector.shape_cast %11 : vector<8x8xf32> to vector<1x8x8xf32>
    %178 = vector.broadcast %177 : vector<1x8x8xf32> to vector<4x8x8xf32>
    %179 = arith.addf %176, %178 : vector<4x8x8xf32>
    %cst_85 = arith.constant dense<0xFF800000> : vector<4x8xf32>
    %180 = vector.multi_reduction <maximumf>, %179, %cst_85 [2] : vector<4x8x8xf32> to vector<4x8xf32>
    %181 = vector.shape_cast %180 : vector<4x8xf32> to vector<4x8x1xf32>
    %182 = vector.broadcast %181 : vector<4x8x1xf32> to vector<4x8x8xf32>
    %183 = arith.subf %179, %182 : vector<4x8x8xf32>
    %184 = math.exp %183 : vector<4x8x8xf32>
    %cst_86 = arith.constant dense<0.000000e+00> : vector<4x8xf32>
    %185 = vector.multi_reduction <add>, %184, %cst_86 [2] : vector<4x8x8xf32> to vector<4x8xf32>
    %186 = vector.shape_cast %185 : vector<4x8xf32> to vector<4x8x1xf32>
    %187 = tpu.reciprocal %186 {approx = true} : vector<4x8x1xf32> -> vector<4x8x1xf32>
    %188 = vector.broadcast %187 : vector<4x8x1xf32> to vector<4x8x8xf32>
    %189 = arith.mulf %184, %188 : vector<4x8x8xf32>
    %190 = arith.truncf %189 : vector<4x8x8xf32> to vector<4x8x8xbf16>
    "tpu.trace_start"() <{level = 10 : i32, message = "hqk,hkd->hqd"}> : () -> ()
    %cst_87 = arith.constant dense<0.000000e+00> : vector<4x8x8xf32>
    %191 = tpu.matmul %190, %175, %cst_87 {dimension_numbers = #tpu.dot_dimension_numbers<[2], [1], [1], [2], [0, 0, 0, 1, 1, 2], [0], [0]>} : vector<4x8x8xbf16>, vector<4x8x8xbf16>, vector<4x8x8xf32> -> vector<4x8x8xf32>
    "tpu.trace_stop"() : () -> ()
    %192 = arith.truncf %191 : vector<4x8x8xf32> to vector<4x8x8xbf16>
    %c1_88 = arith.constant 1 : index
    %c0_89 = arith.constant 0 : index
    %c0_90 = arith.constant 0 : index
    %c0_91 = arith.constant 0 : index
    %193 = vector.load %arg8[%c1_88, %c0_89, %c0_90, %c0_91] : memref<2x4x8x32xbf16, #tpu.memory_space<vmem>>, vector<1x4x8x32xbf16>
    %194 = vector.shape_cast %193 : vector<1x4x8x32xbf16> to vector<4x8x32xbf16>
    "tpu.trace_start"() <{level = 10 : i32, message = "hqd,hde->hqe"}> : () -> ()
    %cst_92 = arith.constant dense<0.000000e+00> : vector<4x8x32xf32>
    %195 = tpu.matmul %192, %194, %cst_92 {dimension_numbers = #tpu.dot_dimension_numbers<[2], [1], [1], [2], [0, 0, 0, 1, 1, 2], [0], [0]>} : vector<4x8x8xbf16>, vector<4x8x32xbf16>, vector<4x8x32xf32> -> vector<4x8x32xf32>
    "tpu.trace_stop"() : () -> ()
    %cst_93 = arith.constant dense<0.000000e+00> : vector<8x32xf32>
    %196 = vector.multi_reduction <add>, %195, %cst_93 [0] : vector<4x8x32xf32> to vector<8x32xf32>
    %197 = arith.addf %134, %196 : vector<8x32xf32>
    %c1_94 = arith.constant 1 : index
    %c0_95 = arith.constant 0 : index
    %c0_96 = arith.constant 0 : index
    %198 = vector.load %arg9[%c1_94, %c0_95, %c0_96] : memref<2x1x32xf32, #tpu.memory_space<vmem>>, vector<1x1x32xf32>
    %199 = vector.shape_cast %198 : vector<1x1x32xf32> to vector<1x32xf32>
    %200 = vector.broadcast %199 : vector<1x32xf32> to vector<8x32xf32>
    %201 = arith.addf %197, %200 : vector<8x32xf32>
    %c1_97 = arith.constant 1 : index
    %c0_98 = arith.constant 0 : index
    %c0_99 = arith.constant 0 : index
    %202 = vector.load %arg10[%c1_97, %c0_98, %c0_99] : memref<2x1x32xf32, #tpu.memory_space<vmem>>, vector<1x1x32xf32>
    %203 = vector.shape_cast %202 : vector<1x1x32xf32> to vector<1x32xf32>
    %c1_100 = arith.constant 1 : index
    %c0_101 = arith.constant 0 : index
    %c0_102 = arith.constant 0 : index
    %204 = vector.load %arg11[%c1_100, %c0_101, %c0_102] : memref<2x1x32xf32, #tpu.memory_space<vmem>>, vector<1x1x32xf32>
    %205 = vector.shape_cast %204 : vector<1x1x32xf32> to vector<1x32xf32>
    %cst_103 = arith.constant dense<0.000000e+00> : vector<8xf32>
    %206 = vector.multi_reduction <add>, %201, %cst_103 [1] : vector<8x32xf32> to vector<8xf32>
    %207 = vector.shape_cast %206 : vector<8xf32> to vector<8x1xf32>
    %cst_104 = arith.constant 3.200000e+01 : f32
    %208 = vector.broadcast %cst_104 : f32 to vector<8x1xf32>
    %209 = arith.divf %207, %208 : vector<8x1xf32>
    %210 = vector.broadcast %209 : vector<8x1xf32> to vector<8x32xf32>
    %211 = arith.subf %201, %210 : vector<8x32xf32>
    %212 = arith.mulf %211, %211 : vector<8x32xf32>
    %cst_105 = arith.constant dense<0.000000e+00> : vector<8xf32>
    %213 = vector.multi_reduction <add>, %212, %cst_105 [1] : vector<8x32xf32> to vector<8xf32>
    %214 = vector.shape_cast %213 : vector<8xf32> to vector<8x1xf32>
    %cst_106 = arith.constant 3.200000e+01 : f32
    %215 = vector.broadcast %cst_106 : f32 to vector<8x1xf32>
    %216 = arith.divf %214, %215 : vector<8x1xf32>
    %217 = vector.broadcast %209 : vector<8x1xf32> to vector<8x32xf32>
    %218 = arith.subf %201, %217 : vector<8x32xf32>
    %cst_107 = arith.constant 9.99999997E-7 : f32
    %219 = vector.broadcast %cst_107 : f32 to vector<8x1xf32>
    %220 = arith.addf %216, %219 : vector<8x1xf32>
    %221 = math.rsqrt %220 : vector<8x1xf32>
    %222 = vector.broadcast %221 : vector<8x1xf32> to vector<8x32xf32>
    %223 = arith.mulf %218, %222 : vector<8x32xf32>
    %224 = vector.broadcast %203 : vector<1x32xf32> to vector<8x32xf32>
    %225 = arith.mulf %223, %224 : vector<8x32xf32>
    %226 = vector.broadcast %205 : vector<1x32xf32> to vector<8x32xf32>
    %227 = arith.addf %225, %226 : vector<8x32xf32>
    %228 = arith.truncf %227 : vector<8x32xf32> to vector<8x32xbf16>
    %c1_108 = arith.constant 1 : index
    %c0_109 = arith.constant 0 : index
    %c0_110 = arith.constant 0 : index
    %229 = vector.load %arg12[%c1_108, %c0_109, %c0_110] : memref<2x32x128xbf16, #tpu.memory_space<vmem>>, vector<1x32x128xbf16>
    %230 = vector.shape_cast %229 : vector<1x32x128xbf16> to vector<32x128xbf16>
    %cst_111 = arith.constant dense<0.000000e+00> : vector<8x128xf32>
    %231 = tpu.matmul %228, %230, %cst_111 {dimension_numbers = #tpu.dot_dimension_numbers<[1], [0], [0], [1], [0, 0, 1, 1], [], []>} : vector<8x32xbf16>, vector<32x128xbf16>, vector<8x128xf32> -> vector<8x128xf32>
    %c1_112 = arith.constant 1 : index
    %c0_113 = arith.constant 0 : index
    %c0_114 = arith.constant 0 : index
    %232 = vector.load %arg13[%c1_112, %c0_113, %c0_114] : memref<2x1x128xf32, #tpu.memory_space<vmem>>, vector<1x1x128xf32>
    %233 = vector.shape_cast %232 : vector<1x1x128xf32> to vector<1x128xf32>
    %234 = vector.broadcast %233 : vector<1x128xf32> to vector<8x128xf32>
    %235 = arith.addf %231, %234 : vector<8x128xf32>
    %236 = arith.mulf %235, %235 : vector<8x128xf32>
    %237 = arith.mulf %235, %236 : vector<8x128xf32>
    %cst_115 = arith.constant 4.471500e-02 : f32
    %238 = vector.broadcast %cst_115 : f32 to vector<8x128xf32>
    %239 = arith.mulf %238, %237 : vector<8x128xf32>
    %240 = arith.addf %235, %239 : vector<8x128xf32>
    %cst_116 = arith.constant 0.797884583 : f32
    %241 = vector.broadcast %cst_116 : f32 to vector<8x128xf32>
    %242 = arith.mulf %241, %240 : vector<8x128xf32>
    %243 = math.tanh %242 : vector<8x128xf32>
    %cst_117 = arith.constant 1.000000e+00 : f32
    %244 = vector.broadcast %cst_117 : f32 to vector<8x128xf32>
    %245 = arith.addf %244, %243 : vector<8x128xf32>
    %cst_118 = arith.constant 5.000000e-01 : f32
    %246 = vector.broadcast %cst_118 : f32 to vector<8x128xf32>
    %247 = arith.mulf %246, %245 : vector<8x128xf32>
    %248 = arith.mulf %235, %247 : vector<8x128xf32>
    %249 = arith.truncf %248 : vector<8x128xf32> to vector<8x128xbf16>
    %c1_119 = arith.constant 1 : index
    %c0_120 = arith.constant 0 : index
    %c0_121 = arith.constant 0 : index
    %250 = vector.load %arg14[%c1_119, %c0_120, %c0_121] : memref<2x128x32xbf16, #tpu.memory_space<vmem>>, vector<1x128x32xbf16>
    %251 = vector.shape_cast %250 : vector<1x128x32xbf16> to vector<128x32xbf16>
    %cst_122 = arith.constant dense<0.000000e+00> : vector<8x32xf32>
    %252 = tpu.matmul %249, %251, %cst_122 {dimension_numbers = #tpu.dot_dimension_numbers<[1], [0], [0], [1], [0, 0, 1, 1], [], []>} : vector<8x128xbf16>, vector<128x32xbf16>, vector<8x32xf32> -> vector<8x32xf32>
    %253 = arith.addf %201, %252 : vector<8x32xf32>
    %c1_123 = arith.constant 1 : index
    %c0_124 = arith.constant 0 : index
    %c0_125 = arith.constant 0 : index
    %254 = vector.load %arg15[%c1_123, %c0_124, %c0_125] : memref<2x1x32xf32, #tpu.memory_space<vmem>>, vector<1x1x32xf32>
    %255 = vector.shape_cast %254 : vector<1x1x32xf32> to vector<1x32xf32>
    %256 = vector.broadcast %255 : vector<1x32xf32> to vector<8x32xf32>
    %257 = arith.addf %253, %256 : vector<8x32xf32>
    %c0_126 = arith.constant 0 : index
    %c0_127 = arith.constant 0 : index
    %258 = vector.load %arg16[%c0_126, %c0_127] : memref<1x32xf32, #tpu.memory_space<vmem>>, vector<1x32xf32>
    %c0_128 = arith.constant 0 : index
    %c0_129 = arith.constant 0 : index
    %259 = vector.load %arg17[%c0_128, %c0_129] : memref<1x32xf32, #tpu.memory_space<vmem>>, vector<1x32xf32>
    %cst_130 = arith.constant dense<0.000000e+00> : vector<8xf32>
    %260 = vector.multi_reduction <add>, %257, %cst_130 [1] : vector<8x32xf32> to vector<8xf32>
    %261 = vector.shape_cast %260 : vector<8xf32> to vector<8x1xf32>
    %cst_131 = arith.constant 3.200000e+01 : f32
    %262 = vector.broadcast %cst_131 : f32 to vector<8x1xf32>
    %263 = arith.divf %261, %262 : vector<8x1xf32>
    %264 = vector.broadcast %263 : vector<8x1xf32> to vector<8x32xf32>
    %265 = arith.subf %257, %264 : vector<8x32xf32>
    %266 = arith.mulf %265, %265 : vector<8x32xf32>
    %cst_132 = arith.constant dense<0.000000e+00> : vector<8xf32>
    %267 = vector.multi_reduction <add>, %266, %cst_132 [1] : vector<8x32xf32> to vector<8xf32>
    %268 = vector.shape_cast %267 : vector<8xf32> to vector<8x1xf32>
    %cst_133 = arith.constant 3.200000e+01 : f32
    %269 = vector.broadcast %cst_133 : f32 to vector<8x1xf32>
    %270 = arith.divf %268, %269 : vector<8x1xf32>
    %271 = vector.broadcast %263 : vector<8x1xf32> to vector<8x32xf32>
    %272 = arith.subf %257, %271 : vector<8x32xf32>
    %cst_134 = arith.constant 9.99999997E-7 : f32
    %273 = vector.broadcast %cst_134 : f32 to vector<8x1xf32>
    %274 = arith.addf %270, %273 : vector<8x1xf32>
    %275 = math.rsqrt %274 : vector<8x1xf32>
    %276 = vector.broadcast %275 : vector<8x1xf32> to vector<8x32xf32>
    %277 = arith.mulf %272, %276 : vector<8x32xf32>
    %278 = vector.broadcast %258 : vector<1x32xf32> to vector<8x32xf32>
    %279 = arith.mulf %277, %278 : vector<8x32xf32>
    %280 = vector.broadcast %259 : vector<1x32xf32> to vector<8x32xf32>
    %281 = arith.addf %279, %280 : vector<8x32xf32>
    %282 = arith.truncf %281 : vector<8x32xf32> to vector<8x32xbf16>
    %c0_135 = arith.constant 0 : index
    %c0_136 = arith.constant 0 : index
    %283 = vector.load %arg18[%c0_135, %c0_136] : memref<32x64xbf16, #tpu.memory_space<vmem>>, vector<32x64xbf16>
    %cst_137 = arith.constant dense<0.000000e+00> : vector<8x64xf32>
    %284 = tpu.matmul %282, %283, %cst_137 {dimension_numbers = #tpu.dot_dimension_numbers<[1], [0], [0], [1], [0, 0, 1, 1], [], []>} : vector<8x32xbf16>, vector<32x64xbf16>, vector<8x64xf32> -> vector<8x64xf32>
    %c0_138 = arith.constant 0 : index
    %c0_139 = arith.constant 0 : index
    %285 = vector.load %arg19[%c0_138, %c0_139] : memref<1x64xf32, #tpu.memory_space<vmem>>, vector<1x64xf32>
    %286 = vector.broadcast %285 : vector<1x64xf32> to vector<8x64xf32>
    %287 = arith.addf %284, %286 : vector<8x64xf32>
    %cst_140 = arith.constant 0.000000e+00 : f32
    %288 = vector.broadcast %cst_140 : f32 to vector<8x64xf32>
    %289 = arith.maximumf %287, %288 : vector<8x64xf32>
    %290 = arith.truncf %289 : vector<8x64xf32> to vector<8x64xbf16>
    %c0_141 = arith.constant 0 : index
    %c0_142 = arith.constant 0 : index
    %291 = vector.load %arg20[%c0_141, %c0_142] : memref<64x128xbf16, #tpu.memory_space<vmem>>, vector<64x128xbf16>
    %cst_143 = arith.constant dense<0.000000e+00> : vector<8x128xf32>
    %292 = tpu.matmul %290, %291, %cst_143 {dimension_numbers = #tpu.dot_dimension_numbers<[1], [0], [0], [1], [0, 0, 1, 1], [], []>} : vector<8x64xbf16>, vector<64x128xbf16>, vector<8x128xf32> -> vector<8x128xf32>
    %c0_144 = arith.constant 0 : index
    %c0_145 = arith.constant 0 : index
    %293 = vector.load %arg21[%c0_144, %c0_145] : memref<1x128xf32, #tpu.memory_space<vmem>>, vector<1x128xf32>
    %294 = vector.broadcast %293 : vector<1x128xf32> to vector<8x128xf32>
    %295 = arith.addf %292, %294 : vector<8x128xf32>
    %c0_146 = arith.constant 0 : index
    %c0_147 = arith.constant 0 : index
    %296 = vector.load %arg22[%c0_146, %c0_147] : memref<8x128xf32, #tpu.memory_space<vmem>>, vector<8x128xf32>
    tpu.vector_store %arg22[%c0_146, %c0_147], %295 {strides = array<i32>} : memref<8x128xf32, #tpu.memory_space<vmem>>, vector<8x128xf32>,
    return
  }
  func.func @transform_0(%arg0: i32) -> (i32, i32) {
    %c0_i32 = arith.constant 0 : i32
    %c0_i32_0 = arith.constant 0 : i32
    return %arg0, %c0_i32 : i32, i32
  }
  func.func @transform_1(%arg0: i32) -> (i32, i32) {
    %c0_i32 = arith.constant 0 : i32
    %c0_i32_0 = arith.constant 0 : i32
    %c0_i32_1 = arith.constant 0 : i32
    return %c0_i32, %c0_i32_0 : i32, i32
  }
  func.func @transform_2(%arg0: i32) -> (i32, i32) {
    %c0_i32 = arith.constant 0 : i32
    %c0_i32_0 = arith.constant 0 : i32
    %c0_i32_1 = arith.constant 0 : i32
    return %c0_i32, %c0_i32_0 : i32, i32
  }
  func.func @transform_3(%arg0: i32) -> (i32, i32, i32) {
    %c0_i32 = arith.constant 0 : i32
    %c0_i32_0 = arith.constant 0 : i32
    %c0_i32_1 = arith.constant 0 : i32
    %c0_i32_2 = arith.constant 0 : i32
    return %c0_i32, %c0_i32_0, %c0_i32_1 : i32, i32, i32
  }
  func.func @transform_4(%arg0: i32) -> (i32, i32, i32) {
    %c0_i32 = arith.constant 0 : i32
    %c0_i32_0 = arith.constant 0 : i32
    %c0_i32_1 = arith.constant 0 : i32
    %c0_i32_2 = arith.constant 0 : i32
    return %c0_i32, %c0_i32_0, %c0_i32_1 : i32, i32, i32
  }
  func.func @transform_5(%arg0: i32) -> (i32, i32, i32) {
    %c0_i32 = arith.constant 0 : i32
    %c0_i32_0 = arith.constant 0 : i32
    %c0_i32_1 = arith.constant 0 : i32
    %c0_i32_2 = arith.constant 0 : i32
    return %c0_i32, %c0_i32_0, %c0_i32_1 : i32, i32, i32
  }
  func.func @transform_6(%arg0: i32) -> (i32, i32, i32) {
    %c0_i32 = arith.constant 0 : i32
    %c0_i32_0 = arith.constant 0 : i32
    %c0_i32_1 = arith.constant 0 : i32
    %c0_i32_2 = arith.constant 0 : i32
    return %c0_i32, %c0_i32_0, %c0_i32_1 : i32, i32, i32
  }
  func.func @transform_7(%arg0: i32) -> (i32, i32, i32, i32) {
    %c0_i32 = arith.constant 0 : i32
    %c0_i32_0 = arith.constant 0 : i32
    %c0_i32_1 = arith.constant 0 : i32
    %c0_i32_2 = arith.constant 0 : i32
    %c0_i32_3 = arith.constant 0 : i32
    return %c0_i32, %c0_i32_0, %c0_i32_1, %c0_i32_2 : i32, i32, i32, i32
  }
  func.func @transform_8(%arg0: i32) -> (i32, i32, i32) {
    %c0_i32 = arith.constant 0 : i32
    %c0_i32_0 = arith.constant 0 : i32
    %c0_i32_1 = arith.constant 0 : i32
    %c0_i32_2 = arith.constant 0 : i32
    return %c0_i32, %c0_i32_0, %c0_i32_1 : i32, i32, i32
  }
  func.func @transform_9(%arg0: i32) -> (i32, i32, i32) {
    %c0_i32 = arith.constant 0 : i32
    %c0_i32_0 = arith.constant 0 : i32
    %c0_i32_1 = arith.constant 0 : i32
    %c0_i32_2 = arith.constant 0 : i32
    return %c0_i32, %c0_i32_0, %c0_i32_1 : i32, i32, i32
  }
  func.func @transform_10(%arg0: i32) -> (i32, i32, i32) {
    %c0_i32 = arith.constant 0 : i32
    %c0_i32_0 = arith.constant 0 : i32
    %c0_i32_1 = arith.constant 0 : i32
    %c0_i32_2 = arith.constant 0 : i32
    return %c0_i32, %c0_i32_0, %c0_i32_1 : i32, i32, i32
  }
  func.func @transform_11(%arg0: i32) -> (i32, i32, i32) {
    %c0_i32 = arith.constant 0 : i32
    %c0_i32_0 = arith.constant 0 : i32
    %c0_i32_1 = arith.constant 0 : i32
    %c0_i32_2 = arith.constant 0 : i32
    return %c0_i32, %c0_i32_0, %c0_i32_1 : i32, i32, i32
  }
  func.func @transform_12(%arg0: i32) -> (i32, i32, i32) {
    %c0_i32 = arith.constant 0 : i32
    %c0_i32_0 = arith.constant 0 : i32
    %c0_i32_1 = arith.constant 0 : i32
    %c0_i32_2 = arith.constant 0 : i32
    return %c0_i32, %c0_i32_0, %c0_i32_1 : i32, i32, i32
  }
  func.func @transform_13(%arg0: i32) -> (i32, i32, i32) {
    %c0_i32 = arith.constant 0 : i32
    %c0_i32_0 = arith.constant 0 : i32
    %c0_i32_1 = arith.constant 0 : i32
    %c0_i32_2 = arith.constant 0 : i32
    return %c0_i32, %c0_i32_0, %c0_i32_1 : i32, i32, i32
  }
  func.func @transform_14(%arg0: i32) -> (i32, i32, i32) {
    %c0_i32 = arith.constant 0 : i32
    %c0_i32_0 = arith.constant 0 : i32
    %c0_i32_1 = arith.constant 0 : i32
    %c0_i32_2 = arith.constant 0 : i32
    return %c0_i32, %c0_i32_0, %c0_i32_1 : i32, i32, i32
  }
  func.func @transform_15(%arg0: i32) -> (i32, i32) {
    %c0_i32 = arith.constant 0 : i32
    %c0_i32_0 = arith.constant 0 : i32
    %c0_i32_1 = arith.constant 0 : i32
    return %c0_i32, %c0_i32_0 : i32, i32
  }
  func.func @transform_16(%arg0: i32) -> (i32, i32) {
    %c0_i32 = arith.constant 0 : i32
    %c0_i32_0 = arith.constant 0 : i32
    %c0_i32_1 = arith.constant 0 : i32
    return %c0_i32, %c0_i32_0 : i32, i32
  }
  func.func @transform_17(%arg0: i32) -> (i32, i32) {
    %c0_i32 = arith.constant 0 : i32
    %c0_i32_0 = arith.constant 0 : i32
    %c0_i32_1 = arith.constant 0 : i32
    return %c0_i32, %c0_i32_0 : i32, i32
  }
  func.func @transform_18(%arg0: i32) -> (i32, i32) {
    %c0_i32 = arith.constant 0 : i32
    %c0_i32_0 = arith.constant 0 : i32
    %c0_i32_1 = arith.constant 0 : i32
    return %c0_i32, %c0_i32_0 : i32, i32
  }
  func.func @transform_19(%arg0: i32) -> (i32, i32) {
    %c0_i32 = arith.constant 0 : i32
    %c0_i32_0 = arith.constant 0 : i32
    %c0_i32_1 = arith.constant 0 : i32
    return %c0_i32, %c0_i32_0 : i32, i32
  }
  func.func @transform_20(%arg0: i32) -> (i32, i32) {
    %c0_i32 = arith.constant 0 : i32
    %c0_i32_0 = arith.constant 0 : i32
    %c0_i32_1 = arith.constant 0 : i32
    return %c0_i32, %c0_i32_0 : i32, i32
  }
  func.func @transform_21(%arg0: i32) -> (i32, i32) {
    %c0_i32 = arith.constant 0 : i32
    %c0_i32_0 = arith.constant 0 : i32
    return %arg0, %c0_i32 : i32, i32
  }
}

</mosaic_0001>

<bundles_post_ra>
// kernel: masked_convit_forward.1
= control target key start
LH: loop header
LB: loop body
LE: loop exit
PB: predicated region body
PF: predicated region fallthrough
CT: control target
= control target key end

     0   :  { %s5062_s0 = inlined_call_operand.vmem [shape: f32[16,256], index: 0, kind: input, shape index: {}]   ;;  %s5063_s1 = inlined_call_operand.vmem [shape: bf16[256,32], index: 1, kind: input, shape index: {}]   ;;  %s5064_s2 = inlined_call_operand.vmem [shape: f32[8,32], index: 2, kind: input, shape index: {}]   ;;  %s5065_s3 = inlined_call_operand.vmem [shape: f32[2,1,32], index: 3, kind: input, shape index: {}]   ;;  %s5066_s4 = inlined_call_operand.vmem [shape: f32[2,1,32], index: 4, kind: input, shape index: {}]   ;;  %s5067_s5 = inlined_call_operand.vmem [shape: bf16[2,32,96], index: 5, kind: input, shape index: {}]   ;;  %s5068_s6 = inlined_call_operand.vmem [shape: f32[2,1,96], index: 6, kind: input, shape index: {}]   ;;  %s5069_s7 = inlined_call_operand.vmem [shape: bf16[2,4,8,32], index: 7, kind: input, shape index: {}]   ;;  %s5070_s8 = inlined_call_operand.vmem [shape: f32[2,1,32], index: 8, kind: input, shape index: {}]   ;;  %s5071_s9 = inlined_call_operand.vmem [shape: f32[2,1,32], index: 9, kind: input, shape index: {}]   ;;  %s5072_s10 = inlined_call_operand.vmem [shape: f32[2,1,32], index: 10, kind: input, shape index: {}]   ;;  %s5073_s11 = inlined_call_operand.vmem [shape: bf16[2,32,128], index: 11, kind: input, shape index: {}]   ;;  %s5074_s12 = inlined_call_operand.vmem [shape: f32[2,1,128], index: 12, kind: input, shape index: {}]   ;;  %s5075_s13 = inlined_call_operand.vmem [shape: bf16[2,128,32], index: 13, kind: input, shape index: {}]   ;;  %s5076_s14 = inlined_call_operand.vmem [shape: f32[2,1,32], index: 14, kind: input, shape index: {}]   ;;  %s5077_s15 = inlined_call_operand.vmem [shape: f32[1,32], index: 15, kind: input, shape index: {}]   ;;  %s5078_s16 = inlined_call_operand.vmem [shape: f32[1,32], index: 16, kind: input, shape index: {}]   ;;  %s5079_s17 = inlined_call_operand.vmem [shape: bf16[32,64], index: 17, kind: input, shape index: {}]   ;;  %s5080_s18 = inlined_call_operand.vmem [shape: f32[1,64], index: 18, kind: input, shape index: {}]   ;;  %s5081_s19 = inlined_call_operand.vmem [shape: bf16[64,128], index: 19, kind: input, shape index: {}]   ;;  %s5082_s20 = inlined_call_operand.vmem [shape: f32[1,128], index: 20, kind: input, shape index: {}]   ;;  %s5083_s21 = inlined_call_operand.vmem [shape: f32[16,128], index: 21, kind: output, shape index: {}]  }
   0x1   :  { %5089 = sst [smem:[#allocation3_spill]] %s5062_s0 }
   0x2   :  { %5090 = sst [smem:[#allocation4_spill]] %s5063_s1 }
   0x3   :  { %5091 = sst [smem:[#allocation5_spill]] %s5064_s2  ;;  %s4557_s2 = smov 0  }
   0x4   :  { %5092 = sst [smem:[#allocation6_spill]] %s5065_s3 }
   0x5   :  { %5093 = sst [smem:[#allocation7_spill]] %s5066_s4 }
   0x6   :  { %5094 = sst [smem:[#allocation8_spill]] %s5067_s5 }
   0x7 LB: > { %5095 = sst [smem:[#allocation2_spill]] %s4442_s2  ;;  %s3818_s25 = sadd.s32 4294967295, %s4442_s2   ;;  %s4442_s2 = sphi %s4557_s2, %s31_s2  }
   0x8   : > { %p3822_p0 = scmp.ge.s32.totalorder %s4442_s2, 1  ;;  %p587_p1 = scmp.lt.s32.totalorder %s4442_s2, 3 }
   0xa   : > { %p588_p2 = pnand %p3822_p0, %p587_p1 }
   0xb   : > { %s5096_s3 = sld [smem:[#allocation4_spill]] (!%p588_p2)  ;;  %p646_p3 = scmp.lt.s32.totalorder (!%p588_p2), %s3818_s25, 1  ;;  %vm835_vm0 = vcmask (!%p588_p2), 261120   ;;  %v4444_v34 = vmov (!%p588_p2), 0.0   ;;  %vm4445_vm1 = vmmov (!%p588_p2), 0   ;;  %vm1359_vm2 = vcmask (!%p588_p2), 64512  }
   0xc   : > { %591 = sbr.rel (%p588_p2) target bundleno = 6213 (0x1845), region = 104  ;;  %s5097_s23 = sld [smem:[#allocation3_spill]] (!%p588_p2)  ;;  %4069 = vmatprep.subr.bf16.mxu1 (!%p588_p2), %v4444_v34  ;;  %4073 = vmatprep.mubr.msk.bf16.mxu1 (!%p588_p2), %vm4445_vm1, %v4444_v34  ;;  %v3844_v46 = vld [vmem:[%s5068_s6] ss:$0 sm:$0xff] (!%p588_p2)  ;;  %vm1595_vm4 = vcmask (!%p588_p2), 1043456   ;;  %vm3720_vm5 = vcmask (!%p588_p2), 523264  }
   0xd   : > { %s5098_s29 = sld [smem:[#allocation5_spill]] (!%p588_p2)  ;;  %s5099_s4 = sld [smem:[#allocation8_spill]] (!%p588_p2) }
   0xe   : > { %s5100_s22 = sld [smem:[#allocation6_spill]] (!%p588_p2)  ;;  %s5101_s26 = sld [smem:[#allocation7_spill]] (!%p588_p2) }
  0x11   : > { %v4344_v0 = vld [vmem:[%s5096_s3 + $0x40] sm:$0xff] (!%p588_p2)   ;;  %v4346_v2 = vld [vmem:[%s5096_s3 + $0x48] sm:$0xff] (!%p588_p2)   ;;  %v4348_v4 = vld [vmem:[%s5096_s3 + $0x50] sm:$0xff] (!%p588_p2)  }
  0x12   : > { %v4345_v1 = vld [vmem:[%s5096_s3] sm:$0xff] (!%p588_p2)   ;;  %3961 = vmatprep.subr.bf16.mxu0 (!%p588_p2), %v4344_v0  ;;  %v4347_v3 = vld [vmem:[%s5096_s3 + $0x8] sm:$0xff] (!%p588_p2)   ;;  %v4349_v5 = vld [vmem:[%s5096_s3 + $0x10] sm:$0xff] (!%p588_p2)  }
  0x13   : > { %3962 = vmatpush3.bf16.msra.mxu0 %v4345_v1  ;;  %s5104_s25 = smov (!%p646_p3, %s3818_s25), 1  ;;  %v4350_v6 = vld [vmem:[%s5096_s3 + $0x58] sm:$0xff]   ;;  %v4352_v8 = vld [vmem:[%s5096_s3 + $0x60] sm:$0xff]   ;;  %v4354_v10 = vld [vmem:[%s5096_s3 + $0x68] sm:$0xff]  }
  0x14   : > { %3963 = vmatprep.subr.bf16.mxu0 %v4346_v2  ;;  %s3960_s28 = sshll.u32 %s5104_s25, 4  ;;  %v4351_v7 = vld [vmem:[%s5096_s3 + $0x18] sm:$0xff]   ;;  %v4353_v9 = vld [vmem:[%s5096_s3 + $0x20] sm:$0xff]   ;;  %v4355_v12 = vld [vmem:[%s5096_s3 + $0x28] sm:$0xff]  }
  0x15   : > { %s650_s1 = scalar_lea.vmem %s5097_s23, %s3960_s28  ;;  %v4356_v14 = vld [vmem:[%s5096_s3 + $0x70] sm:$0xff]   ;;  %v4358_v16 = vld [vmem:[%s5096_s3 + $0x78] sm:$0xff]   ;;  %v692_v21 = vld [vmem:[%s5098_s29] sm:$0xff]  ;;  %s3825_s28 = sshll.u32 %s5104_s25, 3 }
  0x16   : > { %v657_v11 = vld [vmem:[%s650_s1 + $0x8] sm:$0xff]  ;;  %v4357_v15 = vld [vmem:[%s5096_s3 + $0x30] sm:$0xff]   ;;  %v4359_v17 = vld [vmem:[%s5096_s3 + $0x38] sm:$0xff]   ;;  %s654_s29 = scalar_lea.vmem %s5083_s21, %s3825_s28 }
  0x17   : > { %3964 = vmatpush3.bf16.msra.mxu0 %v4347_v3  ;;  %v659_v13 = vpack.c.bf16 %v657_v11, %v657_v11  ;;  %v656_v18 = vld [vmem:[%s650_s1] sm:$0xff]  ;;  %v4361_v35 = vld [vmem:[%s5099_s4 + $0x8] sm:$0xff]  }
  0x18   : > { %3965 = vmatprep.subr.bf16.mxu0 %v4348_v4  ;;  %v658_v19 = vpack.c.bf16 %v656_v18, %v656_v18  ;;  %v4360_v33 = vld [vmem:[%s5099_s4] sm:$0xff]  }
  0x19   : > { %821 = vmatprep.mubr.bf16.mxu0 %v659_v13  ;;  %4070 = vmatpush3.bf16.msra.mxu1 %v4360_v33  ;;  %v3842_v40 = vld [vmem:[%s5100_s22] ss:$0 sm:$0xff] }
  0x1a   : > { %4071 = vmatprep.subr.bf16.mxu1 %v4444_v34  ;;  %v3843_v42 = vld [vmem:[%s5101_s26] ss:$0 sm:$0xff] }
  0x1b   : > { %3966 = vmatpush3.bf16.msra.mxu0 %v4349_v5 }
  0x1c   : > { %3967 = vmatprep.subr.bf16.mxu0 %v4350_v6 }
  0x1d   : > { %4072 = vmatpush3.bf16.msra.mxu1 %v4361_v35 }
  0x1e   : > { %4077 = vmatprep.subr.bf16.mxu1 %v4444_v34 }
  0x1f   : > { %3968 = vmatpush3.bf16.msra.mxu0 %v4351_v7 }
  0x20   : > { %3969 = vmatprep.subr.bf16.mxu0 %v4352_v8 }
  0x23   : > { %3970 = vmatpush3.bf16.msra.mxu0 %v4353_v9 }
  0x24   : > { %3971 = vmatprep.subr.bf16.mxu0 %v4354_v10 }
  0x27   : > { %3972 = vmatpush3.bf16.msra.mxu0 %v4355_v12 }
  0x28   : > { %3973 = vmatprep.subr.bf16.mxu0 %v4356_v14 }
  0x2b   : > { %3974 = vmatpush3.bf16.msra.mxu0 %v4357_v15 }
  0x2c   : > { %3975 = vmatprep.subr.bf16.mxu0 %v4358_v16 }
  0x2f   : > { %3976 = vmatpush3.bf16.msra.mxu0 %v4359_v17 }
  0x30   : > { %4095 = vmatprep.subr.bf16.mxu0 %v4444_v34 }
  0x32   : > { %822 = vmatmul.mubr.bf16.vlgmr.msra.gmra.mrb[0].mxu0 %v658_v19 }
  0x33   : > { %4097 = vmatprep.mubr.msk.bf16.mxu0 %vm4445_vm1, %v4444_v34 }
 0x105   : > { %v3977_v20 = vpop.f32.mrb[0].mxu0 }
 0x106   : > { %v3978_v22 = vpop.f32.mrb[1].mxu0 }
 0x107   : > { %v3979_v23 = vadd.f32 %v3978_v22, %v3977_v20  ;;  %v3980_v24 = vpop.f32.mrb[2].mxu0 }
 0x108   : > { %v3981_v25 = vpop.f32.mrb[3].mxu0  ;;  %v829_v24 = vlaneseq }
 0x109   : > { %v4622_v26 = vadd.f32 %v3979_v23, %v692_v21 }
 0x10a   : > { %v830_v25 = vand.u32 127, %v829_v24 }
 0x10b   : > { %v836_v27 = vsel %vm835_vm0, %v4622_v26, 0.0 }
 0x10c   : > { %837 = vadd.xlane.f32.xlu0 %v836_v27  ;;  %vm831_vm3 = vcmp.lt.s32.totalorder %v830_v25, 5  ;;  %v4446_v27 = vmov -1e+30  }
 0x199   : > { %v838_v28 = vpop.xlane.xlu0 %837 }
 0x19a   : > { %v840_v29 = vmul.f32 0.03125, %v838_v28  ;;  %v4682_v28 = vsel %vm831_vm3, 0.0, %v4446_v27 }
 0x19c   : > { %v841_v30 = vsub.f32 %v4622_v26, %v840_v29 }
 0x19e   : > { %v842_v31 = vmul.f32 %v841_v30, %v841_v30 }
 0x1a0   : > { %v843_v32 = vsel %vm835_vm0, %v842_v31, 0.0 }
 0x1a1   : > { %844 = vadd.xlane.f32.xlu0 %v843_v32 }
 0x22e   : > { %v845_v36 = vpop.xlane.xlu0 %844 }
 0x22f   : > { %v846_v37 = vmul.f32 0.03125, %v845_v36 }
 0x231   : > { %v847_v38 = vadd.f32 1e-06, %v846_v37 }
 0x233   : > { %4390 = vrsqrt.f32 %v847_v38 }
 0x23d   : > { %v4391_v39 = vpop.eup %4390 }
 0x23e   : > { %v849_v41 = vmul.f32 %v4391_v39, %v841_v30 }
 0x240   : > { %v856_v43 = vmul.f32 %v3842_v40, %v849_v41 }
 0x242   : > { %v863_v44 = vadd.f32 %v3843_v42, %v856_v43 }
 0x244   : > { %v864_v45 = vpack.c.bf16 %v863_v44, %v863_v44 }
 0x246   : > { %4074 = vmatmul.mubr.msk.bf16.vlgmr.msra.gmra.mrb[0].mxu1 %vm835_vm0, %v864_v45 }
 0x247   : > { %4079 = vmatprep.mubr.msk.bf16.mxu1 %vm4445_vm1, %v4444_v34 }
 0x319   : > { %v925_v47 = vpop.f32.mrb[0].mxu1 }
 0x31a   : > { %v4075_v48 = vpop.f32.mrb[1].mxu1  ;;  %v926_v49 = vadd.f32 %v3844_v46, %v925_v47 }
 0x31b   : > { %v928_v50 = vpop.f32.mrb[2].mxu1 }
 0x31c   : > { %931 = vxpose.xlu1.b32.start.end [1/1] (short) (narrow) %v926_v49, 96  ;;  %v4076_v51 = vpop.f32.mrb[3].mxu1 }
 0x39c   : > { %v947_v52 = vpop.trf.xlu1 }
 0x3a0   : > { %v948_v53 = vpop.trf.xlu1 }
 0x3a4   : > { %v949_v54 = vpop.trf.xlu1 }
 0x3a8   : > { %v950_v55 = vpop.trf.xlu1 }
 0x3ac   : > { %v951_v56 = vpop.trf.xlu1 }
 0x3ad   : > { %1091 = vxpose.xlu1.b32.start.end [1/1] (short) (narrow) %v951_v56, 8 }
 0x3b0   : > { %v952_v57 = vpop.trf.xlu1 }
 0x3b1   : > { %v4316_v58 = vpack.i.bf16 %v952_v57, %v947_v52 }
 0x3b3   : > { %4317 = vxpose.xlu0.b32.start.end [1/1] (short) (narrow) %v4316_v58, 8 }
 0x3b4   : > { %v953_v59 = vpop.trf.xlu1 }
 0x3b5   : > { %v4323_v60 = vpack.i.bf16 %v953_v59, %v948_v53 }
 0x3b7   : > { %4324 = vxpose.xlu1.b32.start.end [1/1] (short) (narrow) %v4323_v60, 8 }
 0x3b8   : > { %v954_v61 = vpop.trf.xlu1 }
 0x3b9   : > { %1187 = vxpose.xlu0.b32.start.end [1/1] (short) (narrow) %v954_v61, 8 }
 0x3bb   : > { %1027 = vxpose.xlu1.b32.start.end [1/1] (short) (narrow) %v949_v54, 8 }
 0x3bc   : > { %v4654_v62 = vpop.trf.xlu1 }
 0x3bd   : > { %1059 = vxpose.xlu0.b32.start.end [1/1] (short) (narrow) %v950_v55, 8 }
 0x3c0   : > { %v4656_v63 = vpop.trf.xlu1 }
 0x3c4   : > { %v4658_v0 = vpop.trf.xlu1 }
 0x3c8   : > { %v4660_v1 = vpop.trf.xlu1 }
 0x42d   : > { %v1107_v2 = vpop.trf.xlu1 }
 0x42e   : > { %v1351_v3 = vpack.c.bf16 %v1107_v2, %v1107_v2 }
 0x430   : > { %v1364_v4 = vsel %vm1359_vm2, %v1351_v3, 0 }
 0x431   : > { %4078 = vmatpush3.bf16.xpose.msra.mxu1 %v1364_v4 }
 0x432   : > { %4083 = vmatprep.subr.bf16.mxu1 %v4444_v34 }
 0x433   : > { %v4318_v5 = vpop.trf.xlu0 }
 0x434   : > { %v4322_v6 = vunpack.i.h.bf16 %v4318_v5  ;;  %v4319_v7 = vunpack.i.l.bf16 %v4318_v5 }
 0x436   : > { %v1347_v8 = vpack.c.bf16 %v4319_v7, %v4319_v7  ;;  %v1352_v9 = vpack.c.bf16 %v4322_v6, %v4322_v6 }
 0x437   : > { %v4325_v10 = vpop.trf.xlu1 }
 0x438   : > { %4080 = vmatmul.mubr.msk.bf16.vlgmr.msra.gmra.mrb[4].mxu1 %vm1359_vm2, %v1347_v8  ;;  %v1410_v11 = vsel %vm1359_vm2, %v1352_v9, 0  ;;  %v4329_v12 = vunpack.i.h.bf16 %v4325_v10  ;;  %v4326_v13 = vunpack.i.l.bf16 %v4325_v10 }
 0x439   : > { %4084 = vmatpush3.bf16.xpose.msra.mxu1 %v1410_v11  ;;  %4085 = vmatprep.mubr.msk.bf16.mxu1 %vm4445_vm1, %v4444_v34  ;;  %v1203_v14 = vpop.trf.xlu0 }
 0x43a   : > { %4089 = vmatprep.subr.bf16.mxu1 %v4444_v34  ;;  %v1354_v15 = vpack.c.bf16 %v1203_v14, %v1203_v14  ;;  %v1353_v16 = vpack.c.bf16 %v4329_v12, %v4329_v12  ;;  %v1348_v17 = vpack.c.bf16 %v4326_v13, %v4326_v13 }
 0x43b   : > { %v1043_v22 = vpop.trf.xlu1 }
 0x43c   : > { %v1502_v18 = vsel %vm1359_vm2, %v1354_v15, 0  ;;  %v1456_v20 = vsel %vm1359_vm2, %v1353_v16, 0  ;;  %v1349_v23 = vpack.c.bf16 %v1043_v22, %v1043_v22 }
 0x43d   : > { %4096 = vmatpush3.bf16.xpose.msra.mxu0 %v1502_v18  ;;  %v1075_v19 = vpop.trf.xlu0 }
 0x43e   : > { %4107 = vmatprep.subr.bf16.mxu0 %v4444_v34  ;;  %v1350_v21 = vpack.c.bf16 %v1075_v19, %v1075_v19 }
 0x440   : > { %4086 = vmatmul.mubr.msk.bf16.vlgmr.msra.gmra.mrb[8].mxu1 %vm1359_vm2, %v1348_v17 }
 0x441   : > { %4090 = vmatpush3.bf16.xpose.msra.mxu1 %v1456_v20  ;;  %4091 = vmatprep.mubr.msk.bf16.mxu1 %vm4445_vm1, %v4444_v34 }
 0x442   : > { %4101 = vmatprep.subr.bf16.mxu1 %v4444_v34 }
 0x444   : > { %4098 = vmatmul.mubr.msk.bf16.vlgmr.msra.gmra.mrb[4].mxu0 %vm1359_vm2, %v1350_v21 }
 0x445   : > { %4109 = vmatprep.mubr.msk.bf16.mxu0 %vm4445_vm1, %v4444_v34 }
 0x448   : > { %4092 = vmatmul.mubr.msk.bf16.vlgmr.msra.gmra.mrb[12].mxu1 %vm1359_vm2, %v1349_v23 }
 0x449   : > { %4103 = vmatprep.mubr.msk.bf16.mxu1 %vm4445_vm1, %v4444_v34 }
 0x50b   : > { %v1400_v29 = vpop.f32.mrb[4].mxu1 }
 0x50c   : > { %v1401_v30 = vadd.f32 %v1400_v29, %v4682_v28  ;;  %v4081_v31 = vpop.f32.mrb[5].mxu1 }
 0x50d   : > { %v1403_v32 = vpop.f32.mrb[6].mxu1 }
 0x50e   : > { %v4082_v33 = vpop.f32.mrb[7].mxu1  ;;  %v1544_v35 = vsel %vm1359_vm2, %v1401_v30, -inf }
 0x50f   : > { %1545 = vmax.xlane.f32.xlu1 %v1544_v35 }
 0x513   : > { %v1446_v36 = vpop.f32.mrb[8].mxu1 }
 0x514   : > { %v1447_v37 = vadd.f32 %v1446_v36, %v4682_v28  ;;  %v4087_v38 = vpop.f32.mrb[9].mxu1 }
 0x515   : > { %v1449_v39 = vpop.f32.mrb[10].mxu1 }
 0x516   : > { %v4088_v40 = vpop.f32.mrb[11].mxu1  ;;  %v1547_v41 = vsel %vm1359_vm2, %v1447_v37, -inf }
 0x517   : > { %1548 = vmax.xlane.f32.xlu0 %v1547_v41  ;;  %v1538_v42 = vpop.f32.mrb[4].mxu0  ;;  %v1782_v41 = vld [vmem:[%s5069_s7 + $0x4] sm:$0xf] }
 0x518   : > { %v4099_v43 = vpop.f32.mrb[5].mxu0  ;;  %v1539_v49 = vadd.f32 %v1538_v42, %v4682_v28  ;;  %v1835_v42 = vsel %vm1595_vm4, %v1782_v41, 0 }
 0x519   : > { %v1541_v44 = vpop.f32.mrb[6].mxu0  ;;  %v1781_v43 = vld [vmem:[%s5069_s7] sm:$0xf] }
 0x51a   : > { %v4100_v45 = vpop.f32.mrb[7].mxu0  ;;  %v1553_v53 = vsel %vm1359_vm2, %v1539_v49, -inf  ;;  %v1789_v44 = vsel %vm1595_vm4, %v1781_v43, 0 }
 0x51b   : > { %v1492_v46 = vpop.f32.mrb[12].mxu1  ;;  %v1784_v45 = vld [vmem:[%s5069_s7 + $0xc] sm:$0xf] }
 0x51c   : > { %v1493_v47 = vadd.f32 %v1492_v46, %v4682_v28  ;;  %v4093_v48 = vpop.f32.mrb[13].mxu1 }
 0x51d   : > { %v1495_v50 = vpop.f32.mrb[14].mxu1 }
 0x51e   : > { %v4094_v51 = vpop.f32.mrb[15].mxu1  ;;  %v1550_v52 = vsel %vm1359_vm2, %v1493_v47, -inf  ;;  %v1927_v50 = vsel %vm1595_vm4, %v1784_v45, 0  ;;  %v3861_v45 = vld [vmem:[%s5071_s9] ss:$0 sm:$0xff] }
 0x51f   : > { %1551 = vmax.xlane.f32.xlu1 %v1550_v52 }
 0x523   : > { %1554 = vmax.xlane.f32.xlu1 %v1553_v53 }
 0x59c   : > { %v1546_v54 = vpop.xlane.xlu1 %1545 }
 0x59d   : > { %v1556_v55 = vsub.f32 %v1401_v30, %v1546_v54 }
 0x59f   : > { %v1560_v56 = vmul.f32 1.442695, %v1556_v55 }
 0x5a1   : > { %4392 = vpow2.f32 %v1560_v56 }
 0x5a4   : > { %v1549_v57 = vpop.xlane.xlu0 %1548 }
 0x5a5   : > { %v1557_v58 = vsub.f32 %v1447_v37, %v1549_v57 }
 0x5a7   : > { %v1562_v59 = vmul.f32 1.442695, %v1557_v58 }
 0x5a9   : > { %4394 = vpow2.f32 %v1562_v59 }
 0x5ab   : > { %v4393_v60 = vpop.eup %4392 }
 0x5ac   : > { %v1552_v61 = vpop.xlane.xlu1 %1551  ;;  %v1568_v2 = vsel %vm1359_vm2, %v4393_v60, 0.0 }
 0x5ad   : > { %v1558_v3 = vsub.f32 %v1493_v47, %v1552_v61  ;;  %1569 = vadd.xlane.f32.xlu1 %v1568_v2  ;;  %v1783_v47 = vld [vmem:[%s5069_s7 + $0x8] sm:$0xf] }
 0x5ae   : > { %v1881_v56 = vsel %vm1595_vm4, %v1783_v47, 0  ;;  %v3862_v47 = vld [vmem:[%s5072_s10] ss:$0 sm:$0xff] }
 0x5af   : > { %v1564_v4 = vmul.f32 1.442695, %v1558_v3 }
 0x5b0   : > { %v1555_v5 = vpop.xlane.xlu1 %1554 }
 0x5b1   : > { %4396 = vpow2.f32 %v1564_v4  ;;  %v1559_v6 = vsub.f32 %v1539_v49, %v1555_v5 }
 0x5b3   : > { %v4395_v7 = vpop.eup %4394  ;;  %v1566_v8 = vmul.f32 1.442695, %v1559_v6 }
 0x5b4   : > { %v1571_v9 = vsel %vm1359_vm2, %v4395_v7, 0.0 }
 0x5b5   : > { %4398 = vpow2.f32 %v1566_v8  ;;  %1572 = vadd.xlane.f32.xlu0 %v1571_v9 }
 0x5bb   : > { %v4397_v10 = vpop.eup %4396 }
 0x5bc   : > { %v1574_v11 = vsel %vm1359_vm2, %v4397_v10, 0.0 }
 0x5bd   : > { %1575 = vadd.xlane.f32.xlu1 %v1574_v11 }
 0x5bf   : > { %v4399_v12 = vpop.eup %4398 }
 0x5c0   : > { %v1577_v13 = vsel %vm1359_vm2, %v4399_v12, 0.0 }
 0x5c1   : > { %1578 = vadd.xlane.f32.xlu0 %v1577_v13 }
 0x5ee   : > { %1251 = vxpose.xlu0.b32.start.end [1/1] (short) (narrow) %v4656_v63, 8 }
 0x5f0   : > { %1219 = vxpose.xlu1.b32.start.end [1/1] (short) (narrow) %v4654_v62, 8 }
 0x5f2   : > { %1283 = vxpose.xlu0.b32.start.end [1/1] (short) (narrow) %v4658_v0, 8 }
 0x5f6   : > { %1315 = vxpose.xlu0.b32.start.end [1/1] (short) (narrow) %v4660_v1, 8 }
 0x63a   : > { %v1570_v15 = vpop.xlane.xlu1 %1569 }
 0x642   : > { %v1573_v14 = vpop.xlane.xlu0 %1572 }
 0x643   : > { %4400 = vrcp.f32 %v1573_v14 }
 0x644   : > { %4402 = vrcp.f32 %v1570_v15 }
 0x64a   : > { %v1576_v17 = vpop.xlane.xlu1 %1575 }
 0x64d   : > { %v4401_v18 = vpop.eup %4400 }
 0x64e   : > { %v1579_v16 = vpop.xlane.xlu0 %1578  ;;  %v4403_v19 = vpop.eup %4402  ;;  %v1585_v21 = vmul.f32 %v4401_v18, %v4395_v7 }
 0x64f   : > { %4404 = vrcp.f32 %v1579_v16  ;;  %v1584_v62 = vmul.f32 %v4403_v19, %v4393_v60 }
 0x650   : > { %4406 = vrcp.f32 %v1576_v17  ;;  %v1589_v27 = vpack.c.bf16 %v1585_v21, %v1585_v21 }
 0x651   : > { %v1588_v31 = vpack.c.bf16 %v1584_v62, %v1584_v62 }
 0x659   : > { %v4405_v29 = vpop.eup %4404 }
 0x65a   : > { %v4407_v32 = vpop.eup %4406  ;;  %v1587_v35 = vmul.f32 %v4405_v29, %v4399_v12 }
 0x65b   : > { %v1586_v37 = vmul.f32 %v4407_v32, %v4397_v10 }
 0x65c   : > { %v1591_v39 = vpack.c.bf16 %v1587_v35, %v1587_v35 }
 0x65d   : > { %v1590_v40 = vpack.c.bf16 %v1586_v37, %v1586_v37 }
 0x66e   : > { %v1267_v20 = vpop.trf.xlu0 }
 0x66f   : > { %v1356_v63 = vpack.c.bf16 %v1267_v20, %v1267_v20 }
 0x670   : > { %v1235_v22 = vpop.trf.xlu1 }
 0x671   : > { %v1643_v0 = vsel %vm1595_vm4, %v1356_v63, 0  ;;  %v1355_v23 = vpack.c.bf16 %v1235_v22, %v1235_v22 }
 0x672   : > { %4108 = vmatpush3.bf16.msra.mxu0 %v1643_v0  ;;  %v1299_v1 = vpop.trf.xlu0 }
 0x673   : > { %v1597_v24 = vsel %vm1595_vm4, %v1355_v23, 0  ;;  %v1357_v25 = vpack.c.bf16 %v1299_v1, %v1299_v1  ;;  %4119 = vmatprep.subr.bf16.mxu0 %v4444_v34 }
 0x674   : > { %4102 = vmatpush3.bf16.msra.mxu1 %v1597_v24 }
 0x675   : > { %v1689_v30 = vsel %vm1595_vm4, %v1357_v25, 0  ;;  %4110 = vmatmul.mubr.msk.bf16.vlgmr.msra.gmra.mrb[8].mxu0 %vm1359_vm2, %v1589_v27  ;;  %4113 = vmatprep.subr.bf16.mxu1 %v4444_v34 }
 0x676   : > { %v1331_v33 = vpop.trf.xlu0  ;;  %4121 = vmatprep.mubr.msk.bf16.mxu0 %vm4445_vm1, %v4444_v34 }
 0x677   : > { %v1358_v36 = vpack.c.bf16 %v1331_v33, %v1331_v33  ;;  %4104 = vmatmul.mubr.msk.bf16.vlgmr.msra.gmra.mrb[16].mxu1 %vm1359_vm2, %v1588_v31 }
 0x678   : > { %4114 = vmatpush3.bf16.msra.mxu1 %v1689_v30  ;;  %4115 = vmatprep.mubr.msk.bf16.mxu1 %vm4445_vm1, %v4444_v34  ;;  %v3860_v30 = vld [vmem:[%s5070_s8] ss:$0 sm:$0xff] }
 0x679   : > { %v1735_v38 = vsel %vm1595_vm4, %v1358_v36, 0  ;;  %4125 = vmatprep.subr.bf16.mxu1 %v4444_v34 }
 0x67a   : > { %4120 = vmatpush3.bf16.msra.mxu0 %v1735_v38 }
 0x67b   : > { %4131 = vmatprep.subr.bf16.mxu0 %v4444_v34 }
 0x67d   : > { %4122 = vmatmul.mubr.msk.bf16.vlgmr.msra.gmra.mrb[12].mxu0 %vm1359_vm2, %v1591_v39 }
 0x67e   : > { %4133 = vmatprep.mubr.msk.bf16.mxu0 %vm4445_vm1, %v4444_v34  ;;  %4132 = vmatpush3.bf16.msra.mxu0 %v1835_v42 }
 0x67f   : > { %4116 = vmatmul.mubr.msk.bf16.vlgmr.msra.gmra.mrb[20].mxu1 %vm1359_vm2, %v1590_v40  ;;  %4143 = vmatprep.subr.bf16.mxu0 %v4444_v34  ;;  %v4362_v40 = vld [vmem:[%s5073_s11] sm:$0xff]  }
 0x680   : > { %4127 = vmatprep.mubr.msk.bf16.mxu1 %vm4445_vm1, %v4444_v34  ;;  %4126 = vmatpush3.bf16.msra.mxu1 %v1789_v44 }
 0x681   : > { %4137 = vmatprep.subr.bf16.mxu1 %v4444_v34 }
 0x748   : > { %v1679_v46 = vpop.f32.mrb[8].mxu0 }
 0x749   : > { %v1778_v48 = vpack.c.bf16 %v1679_v46, %v1679_v46  ;;  %v4111_v49 = vpop.f32.mrb[9].mxu0 }
 0x74a   : > { %v1633_v51 = vpop.f32.mrb[16].mxu1  ;;  %v1682_v52 = vpop.f32.mrb[10].mxu0 }
 0x74b   : > { %v1777_v53 = vpack.c.bf16 %v1633_v51, %v1633_v51  ;;  %v4105_v54 = vpop.f32.mrb[17].mxu1  ;;  %v4112_v55 = vpop.f32.mrb[11].mxu0  ;;  %4134 = vmatmul.mubr.msk.bf16.vlgmr.msra.gmra.mrb[16].mxu0 %vm1359_vm2, %v1778_v48  ;;  %v4364_v51 = vld [vmem:[%s5075_s13] sm:$0xff]   ;;  %v4365_v52 = vld [vmem:[%s5075_s13 + $0x8] sm:$0xff]  }
 0x74c   : > { %v1636_v57 = vpop.f32.mrb[18].mxu1  ;;  %4144 = vmatpush3.bf16.msra.mxu0 %v1927_v50  ;;  %4145 = vmatprep.mubr.msk.bf16.mxu0 %vm4445_vm1, %v4444_v34  ;;  %v4367_v54 = vld [vmem:[%s5075_s13 + $0x18] sm:$0xff]   ;;  %v4368_v55 = vld [vmem:[%s5075_s13 + $0x20] sm:$0xff]  }
 0x74d   : > { %v4106_v58 = vpop.f32.mrb[19].mxu1  ;;  %4128 = vmatmul.mubr.msk.bf16.vlgmr.msra.gmra.mrb[24].mxu1 %vm1359_vm2, %v1777_v53  ;;  %4157 = vmatprep.subr.bf16.mxu0 %v4444_v34  ;;  %v4366_v53 = vld [vmem:[%s5075_s13 + $0x10] sm:$0xff]  }
 0x74e   : > { %4138 = vmatpush3.bf16.msra.mxu1 %v1881_v56  ;;  %4139 = vmatprep.mubr.msk.bf16.mxu1 %vm4445_vm1, %v4444_v34  ;;  %v4369_v56 = vld [vmem:[%s5075_s13 + $0x28] sm:$0xff]   ;;  %v4370_v57 = vld [vmem:[%s5075_s13 + $0x30] sm:$0xff]   ;;  %v4371_v58 = vld [vmem:[%s5075_s13 + $0x38] sm:$0xff]  }
 0x74f   : > { %4149 = vmatprep.subr.bf16.mxu1 %v4444_v34 }
 0x750   : > { %v1771_v59 = vpop.f32.mrb[12].mxu0 }
 0x751   : > { %v1780_v60 = vpack.c.bf16 %v1771_v59, %v1771_v59  ;;  %v4123_v61 = vpop.f32.mrb[13].mxu0  ;;  %v3863_v59 = vld [vmem:[%s5074_s12] ss:$0 sm:$0xff] }
 0x752   : > { %v1725_v2 = vpop.f32.mrb[20].mxu1  ;;  %v1774_v3 = vpop.f32.mrb[14].mxu0 }
 0x753   : > { %v1779_v4 = vpack.c.bf16 %v1725_v2, %v1725_v2  ;;  %v4117_v5 = vpop.f32.mrb[21].mxu1  ;;  %v4124_v6 = vpop.f32.mrb[15].mxu0  ;;  %4146 = vmatmul.mubr.msk.bf16.vlgmr.msra.gmra.mrb[20].mxu0 %vm1359_vm2, %v1780_v60 }
 0x754   : > { %v1728_v7 = vpop.f32.mrb[22].mxu1  ;;  %4173 = vmatprep.mubr.msk.bf16.mxu0 %vm4445_vm1, %v4444_v34  ;;  %4158 = vmatpush3.bf16.msra.mxu0 %v4364_v51 }
 0x755   : > { %v4118_v8 = vpop.f32.mrb[23].mxu1  ;;  %4140 = vmatmul.mubr.msk.bf16.vlgmr.msra.gmra.mrb[28].mxu1 %vm1359_vm2, %v1779_v4  ;;  %4159 = vmatprep.subr.bf16.mxu0 %v4444_v34 }
 0x756   : > { %4153 = vmatprep.mubr.msk.bf16.mxu1 %vm4445_vm1, %v4444_v34  ;;  %4150 = vmatpush3.bf16.msra.mxu1 %v4362_v40 }
 0x757   : > { %4151 = vmatprep.subr.bf16.mxu1 %v4444_v34 }
 0x758   : > { %4160 = vmatpush3.bf16.msra.mxu0 %v4365_v52 }
 0x759   : > { %4161 = vmatprep.subr.bf16.mxu0 %v4444_v34 }
 0x75c   : > { %4162 = vmatpush3.bf16.msra.mxu0 %v4366_v53 }
 0x75d   : > { %4163 = vmatprep.subr.bf16.mxu0 %v4444_v34 }
 0x760   : > { %4164 = vmatpush3.bf16.msra.mxu0 %v4367_v54 }
 0x761   : > { %4165 = vmatprep.subr.bf16.mxu0 %v4444_v34 }
 0x764   : > { %4166 = vmatpush3.bf16.msra.mxu0 %v4368_v55 }
 0x765   : > { %4167 = vmatprep.subr.bf16.mxu0 %v4444_v34 }
 0x768   : > { %4168 = vmatpush3.bf16.msra.mxu0 %v4369_v56 }
 0x769   : > { %4169 = vmatprep.subr.bf16.mxu0 %v4444_v34 }
 0x76c   : > { %4170 = vmatpush3.bf16.msra.mxu0 %v4370_v57 }
 0x76d   : > { %4171 = vmatprep.subr.bf16.mxu0 %v4444_v34 }
 0x770   : > { %4172 = vmatpush3.bf16.msra.mxu0 %v4371_v58 }
 0x771   : > { %4203 = vmatprep.subr.bf16.mxu0 %v4444_v34 }
 0x81e   : > { %v1871_v9 = vpop.f32.mrb[16].mxu0 }
 0x81f   : > { %v4135_v10 = vpop.f32.mrb[17].mxu0  ;;  %v1970_v13 = vsel %vm835_vm0, %v1871_v9, 0.0 }
 0x820   : > { %v1825_v11 = vpop.f32.mrb[24].mxu1  ;;  %v1874_v12 = vpop.f32.mrb[18].mxu0 }
 0x821   : > { %v1969_v14 = vsel %vm835_vm0, %v1825_v11, 0.0  ;;  %v4129_v15 = vpop.f32.mrb[25].mxu1  ;;  %v4136_v16 = vpop.f32.mrb[19].mxu0 }
 0x822   : > { %v1971_v17 = vadd.f32 %v1970_v13, %v1969_v14  ;;  %v1828_v18 = vpop.f32.mrb[26].mxu1  ;;  %v3875_v16 = vld [vmem:[%s5076_s14] ss:$0 sm:$0xff] }
 0x823   : > { %v4130_v19 = vpop.f32.mrb[27].mxu1 }
 0x826   : > { %v1963_v20 = vpop.f32.mrb[20].mxu0 }
 0x827   : > { %v4147_v21 = vpop.f32.mrb[21].mxu0  ;;  %v1974_v25 = vsel %vm835_vm0, %v1963_v20, 0.0 }
 0x828   : > { %v1917_v63 = vpop.f32.mrb[28].mxu1  ;;  %v1966_v22 = vpop.f32.mrb[22].mxu0 }
 0x829   : > { %v1972_v62 = vsel %vm835_vm0, %v1917_v63, 0.0  ;;  %v4141_v0 = vpop.f32.mrb[29].mxu1  ;;  %v4148_v23 = vpop.f32.mrb[23].mxu0 }
 0x82a   : > { %v1973_v1 = vadd.f32 %v1972_v62, %v1971_v17  ;;  %v1920_v24 = vpop.f32.mrb[30].mxu1 }
 0x82b   : > { %v4142_v27 = vpop.f32.mrb[31].mxu1  ;;  %v4372_v24 = vld [vmem:[%s5099_s4 + $0x10] sm:$0xff]  }
 0x82c   : > { %v1975_v29 = vadd.f32 %v1974_v25, %v1973_v1  ;;  %v4373_v25 = vld [vmem:[%s5099_s4 + $0x18] sm:$0xff]  }
 0x82e   : > { %v1976_v31 = vadd.f32 %v1975_v29, %v4622_v26  ;;  %v4363_v26 = vld [vmem:[%s5073_s11 + $0x8] sm:$0xff]  }
 0x82f   : > { %4152 = vmatpush3.bf16.msra.mxu1 %v4363_v26 }
 0x830   : > { %v4760_v32 = vadd.f32 %v3860_v30, %v1976_v31  ;;  %4177 = vmatprep.subr.bf16.mxu1 %v4444_v34 }
 0x832   : > { %v1987_v33 = vsel %vm835_vm0, %v4760_v32, 0.0 }
 0x833   : > { %1988 = vadd.xlane.f32.xlu1 %v1987_v33 }
 0x8c0   : > { %v1989_v35 = vpop.xlane.xlu1 %1988 }
 0x8c1   : > { %v1990_v36 = vmul.f32 0.03125, %v1989_v35  ;;  %v3879_v35 = vld [vmem:[%s5101_s26 + $0x1] ss:$0 sm:$0xff] }
 0x8c3   : > { %v1991_v37 = vsub.f32 %v4760_v32, %v1990_v36 }
 0x8c5   : > { %v1992_v38 = vmul.f32 %v1991_v37, %v1991_v37 }
 0x8c7   : > { %v1993_v39 = vsel %vm835_vm0, %v1992_v38, 0.0 }
 0x8c8   : > { %1994 = vadd.xlane.f32.xlu0 %v1993_v39  ;;  %v3885_v39 = vld [vmem:[%s5068_s6 + $0x1] ss:$0 sm:$0xff] }
 0x955   : > { %v1995_v41 = vpop.xlane.xlu0 %1994 }
 0x956   : > { %v1996_v42 = vmul.f32 0.03125, %v1995_v41 }
 0x958   : > { %v1997_v43 = vadd.f32 1e-06, %v1996_v42 }
 0x95a   : > { %4408 = vrsqrt.f32 %v1997_v43 }
 0x964   : > { %v4409_v44 = vpop.eup %4408 }
 0x965   : > { %v1999_v46 = vmul.f32 %v4409_v44, %v1991_v37 }
 0x967   : > { %v2006_v48 = vmul.f32 %v3861_v45, %v1999_v46 }
 0x969   : > { %v2013_v49 = vadd.f32 %v3862_v47, %v2006_v48 }
 0x96b   : > { %v2014_v50 = vpack.c.bf16 %v2013_v49, %v2013_v49 }
 0x96d   : > { %4154 = vmatmul.mubr.msk.bf16.vlgmr.msra.gmra.mrb[32].mxu1 %vm835_vm0, %v2014_v50 }
 0x96e   : > { %4181 = vmatprep.mubr.msk.bf16.mxu1 %vm4445_vm1, %v4444_v34  ;;  %4178 = vmatpush3.bf16.msra.mxu1 %v4372_v24 }
 0x96f   : > { %4179 = vmatprep.subr.bf16.mxu1 %v4444_v34 }
 0x972   : > { %4180 = vmatpush3.bf16.msra.mxu1 %v4373_v25 }
 0x973   : > { %4185 = vmatprep.subr.bf16.mxu1 %v4444_v34 }
 0xa40   : > { %v2075_v60 = vpop.f32.mrb[32].mxu1 }
 0xa41   : > { %v2076_v61 = vadd.f32 %v3863_v59, %v2075_v60  ;;  %v4155_v2 = vpop.f32.mrb[33].mxu1 }
 0xa42   : > { %v2078_v3 = vpop.f32.mrb[34].mxu1 }
 0xa43   : > { %v2081_v4 = vmul.f32 %v2076_v61, %v2076_v61  ;;  %v4156_v5 = vpop.f32.mrb[35].mxu1 }
 0xa45   : > { %v2082_v6 = vmul.f32 %v2081_v4, %v2076_v61 }
 0xa47   : > { %v2083_v7 = vmul.f32 0.044715, %v2082_v6 }
 0xa49   : > { %v2084_v8 = vadd.f32 %v2083_v7, %v2076_v61 }
 0xa4b   : > { %v2085_v9 = vmul.f32 0.7978846, %v2084_v8 }
 0xa4d   : > { %4410 = vtanh.f32 %v2085_v9 }
 0xa57   : > { %v4411_v10 = vpop.eup %4410 }
 0xa58   : > { %v2087_v11 = vadd.f32 1.0, %v4411_v10 }
 0xa5a   : > { %v2088_v12 = vmul.f32 0.5, %v2087_v11 }
 0xa5c   : > { %v2089_v13 = vmul.f32 %v2088_v12, %v2076_v61 }
 0xa5e   : > { %v2090_v14 = vpack.c.bf16 %v2089_v13, %v2089_v13 }
 0xa60   : > { %4174 = vmatmul.mubr.bf16.vlgmr.msra.gmra.mrb[24].mxu0 %v2090_v14 }
 0xa61   : > { %4205 = vmatprep.mubr.msk.bf16.mxu0 %vm4445_vm1, %v4444_v34 }
 0xb33   : > { %v2189_v15 = vpop.f32.mrb[24].mxu0 }
 0xb34   : > { %v2195_v17 = vadd.f32 %v2189_v15, %v4760_v32  ;;  %v4175_v18 = vpop.f32.mrb[25].mxu0  ;;  %v3878_v32 = vld [vmem:[%s5100_s22 + $0x1] ss:$0 sm:$0xff] }
 0xb35   : > { %v2192_v19 = vpop.f32.mrb[26].mxu0 }
 0xb36   : > { %v4824_v20 = vadd.f32 %v3875_v16, %v2195_v17  ;;  %v4176_v21 = vpop.f32.mrb[27].mxu0 }
 0xb38   : > { %v2208_v63 = vsel %vm835_vm0, %v4824_v20, 0.0 }
 0xb39   : > { %2209 = vadd.xlane.f32.xlu1 %v2208_v63 }
 0xbc6   : > { %v2210_v22 = vpop.xlane.xlu1 %2209 }
 0xbc7   : > { %v2211_v62 = vmul.f32 0.03125, %v2210_v22 }
 0xbc9   : > { %v2212_v0 = vsub.f32 %v4824_v20, %v2211_v62 }
 0xbcb   : > { %v2213_v23 = vmul.f32 %v2212_v0, %v2212_v0 }
 0xbcd   : > { %v2214_v1 = vsel %vm835_vm0, %v2213_v23, 0.0 }
 0xbce   : > { %2215 = vadd.xlane.f32.xlu1 %v2214_v1 }
 0xc5b   : > { %v2216_v27 = vpop.xlane.xlu1 %2215 }
 0xc5c   : > { %v2217_v29 = vmul.f32 0.03125, %v2216_v27 }
 0xc5e   : > { %v2218_v30 = vadd.f32 1e-06, %v2217_v29 }
 0xc60   : > { %4412 = vrsqrt.f32 %v2218_v30 }
 0xc6a   : > { %v4413_v31 = vpop.eup %4412 }
 0xc6b   : > { %v2220_v33 = vmul.f32 %v4413_v31, %v2212_v0 }
 0xc6d   : > { %v2227_v36 = vmul.f32 %v3878_v32, %v2220_v33 }
 0xc6f   : > { %v2234_v37 = vadd.f32 %v3879_v35, %v2227_v36 }
 0xc71   : > { %v2235_v38 = vpack.c.bf16 %v2234_v37, %v2234_v37 }
 0xc73   : > { %4182 = vmatmul.mubr.msk.bf16.vlgmr.msra.gmra.mrb[36].mxu1 %vm835_vm0, %v2235_v38 }
 0xc74   : > { %4187 = vmatprep.mubr.msk.bf16.mxu1 %vm4445_vm1, %v4444_v34 }
 0xd46   : > { %v2298_v40 = vpop.f32.mrb[36].mxu1 }
 0xd47   : > { %v2299_v26 = vadd.f32 %v3885_v39, %v2298_v40  ;;  %v4183_v41 = vpop.f32.mrb[37].mxu1 }
 0xd48   : > { %v2301_v42 = vpop.f32.mrb[38].mxu1 }
 0xd49   : > { %2304 = vxpose.xlu1.b32.start.end [1/1] (short) (narrow) %v2299_v26, 96  ;;  %v4184_v43 = vpop.f32.mrb[39].mxu1 }
 0xdc9   : > { %v2320_v44 = vpop.trf.xlu1 }
 0xdcd   : > { %v2321_v45 = vpop.trf.xlu1 }
 0xdd1   : > { %v2322_v46 = vpop.trf.xlu1 }
 0xdd5   : > { %v2323_v47 = vpop.trf.xlu1 }
 0xdd9   : > { %v2324_v48 = vpop.trf.xlu1 }
 0xdda   : > { %2464 = vxpose.xlu0.b32.start.end [1/1] (short) (narrow) %v2324_v48, 8 }
 0xddd   : > { %v2325_v49 = vpop.trf.xlu1 }
 0xdde   : > { %v4330_v50 = vpack.i.bf16 %v2325_v49, %v2320_v44 }
 0xde0   : > { %4331 = vxpose.xlu0.b32.start.end [1/1] (short) (narrow) %v4330_v50, 8 }
 0xde1   : > { %v2326_v51 = vpop.trf.xlu1 }
 0xde2   : > { %v4337_v52 = vpack.i.bf16 %v2326_v51, %v2321_v45 }
 0xde4   : > { %4338 = vxpose.xlu0.b32.start.end [1/1] (short) (narrow) %v4337_v52, 8 }
 0xde5   : > { %v2327_v53 = vpop.trf.xlu1 }
 0xde6   : > { %2560 = vxpose.xlu1.b32.start.end [1/1] (short) (narrow) %v2327_v53, 8 }
 0xde8   : > { %2400 = vxpose.xlu0.b32.start.end [1/1] (short) (narrow) %v2322_v46, 8 }
 0xde9   : > { %v4850_v54 = vpop.trf.xlu1 }
 0xdec   : > { %2432 = vxpose.xlu0.b32.start.end [1/1] (short) (narrow) %v2323_v47, 8 }
 0xded   : > { %v4852_v55 = vpop.trf.xlu1 }
 0xdf1   : > { %v4854_v57 = vpop.trf.xlu1 }
 0xdf5   : > { %v4858_v61 = vpop.trf.xlu1 }
 0xe5a   : > { %v2480_v56 = vpop.trf.xlu0 }
 0xe5b   : > { %v2724_v58 = vpack.c.bf16 %v2480_v56, %v2480_v56 }
 0xe5d   : > { %v2736_v59 = vsel %vm1359_vm2, %v2724_v58, 0 }
 0xe5e   : > { %4186 = vmatpush3.bf16.xpose.msra.mxu1 %v2736_v59 }
 0xe5f   : > { %4191 = vmatprep.subr.bf16.mxu1 %v4444_v34 }
 0xe60   : > { %v4332_v60 = vpop.trf.xlu0 }
 0xe61   : > { %v4336_v2 = vunpack.i.h.bf16 %v4332_v60  ;;  %v4333_v3 = vunpack.i.l.bf16 %v4332_v60 }
 0xe63   : > { %v2720_v4 = vpack.c.bf16 %v4333_v3, %v4333_v3  ;;  %v2725_v5 = vpack.c.bf16 %v4336_v2, %v4336_v2 }
 0xe64   : > { %v4339_v6 = vpop.trf.xlu0 }
 0xe65   : > { %4188 = vmatmul.mubr.msk.bf16.vlgmr.msra.gmra.mrb[40].mxu1 %vm1359_vm2, %v2720_v4  ;;  %v2782_v7 = vsel %vm1359_vm2, %v2725_v5, 0  ;;  %v4343_v8 = vunpack.i.h.bf16 %v4339_v6  ;;  %v4340_v10 = vunpack.i.l.bf16 %v4339_v6 }
 0xe66   : > { %4192 = vmatpush3.bf16.xpose.msra.mxu1 %v2782_v7  ;;  %v2576_v9 = vpop.trf.xlu1  ;;  %4193 = vmatprep.mubr.msk.bf16.mxu1 %vm4445_vm1, %v4444_v34 }
 0xe67   : > { %v2727_v11 = vpack.c.bf16 %v2576_v9, %v2576_v9  ;;  %4197 = vmatprep.subr.bf16.mxu1 %v4444_v34  ;;  %v2726_v14 = vpack.c.bf16 %v4343_v8, %v4343_v8  ;;  %v2721_v15 = vpack.c.bf16 %v4340_v10, %v4340_v10 }
 0xe68   : > { %v2416_v12 = vpop.trf.xlu0 }
 0xe69   : > { %v2874_v13 = vsel %vm1359_vm2, %v2727_v11, 0  ;;  %v2828_v18 = vsel %vm1359_vm2, %v2726_v14, 0  ;;  %v2722_v19 = vpack.c.bf16 %v2416_v12, %v2416_v12 }
 0xe6a   : > { %4204 = vmatpush3.bf16.xpose.msra.mxu0 %v2874_v13 }
 0xe6b   : > { %4215 = vmatprep.subr.bf16.mxu0 %v4444_v34 }
 0xe6c   : > { %v2448_v16 = vpop.trf.xlu0 }
 0xe6d   : > { %4194 = vmatmul.mubr.msk.bf16.vlgmr.msra.gmra.mrb[44].mxu1 %vm1359_vm2, %v2721_v15  ;;  %v2723_v17 = vpack.c.bf16 %v2448_v16, %v2448_v16 }
 0xe6e   : > { %4198 = vmatpush3.bf16.xpose.msra.mxu1 %v2828_v18  ;;  %4199 = vmatprep.mubr.msk.bf16.mxu1 %vm4445_vm1, %v4444_v34 }
 0xe6f   : > { %4209 = vmatprep.subr.bf16.mxu1 %v4444_v34 }
 0xe71   : > { %4206 = vmatmul.mubr.msk.bf16.vlgmr.msra.gmra.mrb[28].mxu0 %vm1359_vm2, %v2723_v17 }
 0xe72   : > { %4217 = vmatprep.mubr.msk.bf16.mxu0 %vm4445_vm1, %v4444_v34 }
 0xe75   : > { %4200 = vmatmul.mubr.msk.bf16.vlgmr.msra.gmra.mrb[48].mxu1 %vm1359_vm2, %v2722_v19 }
 0xe76   : > { %4211 = vmatprep.mubr.msk.bf16.mxu1 %vm4445_vm1, %v4444_v34 }
 0xf38   : > { %v2772_v21 = vpop.f32.mrb[40].mxu1 }
 0xf39   : > { %v2773_v63 = vadd.f32 %v2772_v21, %v4682_v28  ;;  %v4189_v22 = vpop.f32.mrb[41].mxu1 }
 0xf3a   : > { %v2775_v62 = vpop.f32.mrb[42].mxu1 }
 0xf3b   : > { %v4190_v0 = vpop.f32.mrb[43].mxu1  ;;  %v2916_v23 = vsel %vm1359_vm2, %v2773_v63, -inf }
 0xf3c   : > { %2917 = vmax.xlane.f32.xlu0 %v2916_v23 }
 0xf40   : > { %v2818_v1 = vpop.f32.mrb[44].mxu1 }
 0xf41   : > { %v2819_v24 = vadd.f32 %v2818_v1, %v4682_v28  ;;  %v4195_v25 = vpop.f32.mrb[45].mxu1 }
 0xf42   : > { %v2821_v27 = vpop.f32.mrb[46].mxu1 }
 0xf43   : > { %v4196_v29 = vpop.f32.mrb[47].mxu1  ;;  %v2919_v30 = vsel %vm1359_vm2, %v2819_v24, -inf }
 0xf44   : > { %v2910_v31 = vpop.f32.mrb[28].mxu0  ;;  %2920 = vmax.xlane.f32.xlu1 %v2919_v30  ;;  %v3897_v29 = vld [vmem:[%s5069_s7 + $0x10] sm:$0xf] }
 0xf45   : > { %v2911_v32 = vadd.f32 %v2910_v31, %v4682_v28  ;;  %v4207_v33 = vpop.f32.mrb[29].mxu0  ;;  %v3161_v30 = vsel %vm1595_vm4, %v3897_v29, 0  ;;  %v3898_v31 = vld [vmem:[%s5069_s7 + $0x14] sm:$0xf] }
 0xf46   : > { %v2913_v35 = vpop.f32.mrb[30].mxu0  ;;  %v3899_v33 = vld [vmem:[%s5069_s7 + $0x18] sm:$0xf] }
 0xf47   : > { %v4208_v36 = vpop.f32.mrb[31].mxu0  ;;  %v2925_v37 = vsel %vm1359_vm2, %v2911_v32, -inf }
 0xf48   : > { %2926 = vmax.xlane.f32.xlu0 %v2925_v37  ;;  %v2864_v38 = vpop.f32.mrb[48].mxu1 }
 0xf49   : > { %v2865_v39 = vadd.f32 %v2864_v38, %v4682_v28  ;;  %v4201_v40 = vpop.f32.mrb[49].mxu1  ;;  %v3253_v38 = vsel %vm1595_vm4, %v3899_v33, 0 }
 0xf4a   : > { %v2867_v26 = vpop.f32.mrb[50].mxu1 }
 0xf4b   : > { %v4202_v41 = vpop.f32.mrb[51].mxu1  ;;  %v2922_v42 = vsel %vm1359_vm2, %v2865_v39, -inf  ;;  %v3900_v26 = vld [vmem:[%s5069_s7 + $0x1c] sm:$0xf] }
 0xf4c   : > { %2923 = vmax.xlane.f32.xlu0 %v2922_v42 }
 0xf77   : > { %2624 = vxpose.xlu1.b32.start.end [1/1] (short) (narrow) %v4852_v55, 8 }
 0xf79   : > { %2592 = vxpose.xlu0.b32.start.end [1/1] (short) (narrow) %v4850_v54, 8 }
 0xfc9   : > { %v2918_v43 = vpop.xlane.xlu0 %2917 }
 0xfca   : > { %v2928_v44 = vsub.f32 %v2773_v63, %v2918_v43 }
 0xfcc   : > { %v2932_v45 = vmul.f32 1.442695, %v2928_v44  ;;  %v3299_v44 = vsel %vm1595_vm4, %v3900_v26, 0  ;;  %v4378_v26 = vld [vmem:[%s5075_s13 + $0x50] sm:$0xff]  }
 0xfce   : > { %4414 = vpow2.f32 %v2932_v45 }
 0xfd1   : > { %v2921_v46 = vpop.xlane.xlu1 %2920 }
 0xfd2   : > { %v2929_v47 = vsub.f32 %v2819_v24, %v2921_v46 }
 0xfd4   : > { %v2934_v48 = vmul.f32 1.442695, %v2929_v47 }
 0xfd5   : > { %v2927_v49 = vpop.xlane.xlu0 %2926 }
 0xfd6   : > { %4416 = vpow2.f32 %v2934_v48  ;;  %v2931_v28 = vsub.f32 %v2911_v32, %v2927_v49  ;;  %v3207_v32 = vsel %vm1595_vm4, %v3898_v31, 0 }
 0xfd8   : > { %v4415_v50 = vpop.eup %4414  ;;  %v2938_v51 = vmul.f32 1.442695, %v2931_v28 }
 0xfd9   : > { %v2924_v52 = vpop.xlane.xlu0 %2923  ;;  %v2940_v53 = vsel %vm1359_vm2, %v4415_v50, 0.0 }
 0xfda   : > { %4418 = vpow2.f32 %v2938_v51  ;;  %v2930_v56 = vsub.f32 %v2865_v39, %v2924_v52  ;;  %2941 = vadd.xlane.f32.xlu0 %v2940_v53 }
 0xfdc   : > { %v2936_v55 = vmul.f32 1.442695, %v2930_v56 }
 0xfde   : > { %4420 = vpow2.f32 %v2936_v55 }
 0xfe0   : > { %v4417_v54 = vpop.eup %4416 }
 0xfe1   : > { %v2943_v58 = vsel %vm1359_vm2, %v4417_v54, 0.0 }
 0xfe2   : > { %2944 = vadd.xlane.f32.xlu0 %v2943_v58 }
 0xfe4   : > { %v4419_v59 = vpop.eup %4418 }
 0xfe5   : > { %v2949_v60 = vsel %vm1359_vm2, %v4419_v59, 0.0 }
 0xfe6   : > { %2950 = vadd.xlane.f32.xlu0 %v2949_v60 }
 0xfe8   : > { %v4421_v2 = vpop.eup %4420 }
 0xfe9   : > { %v2946_v3 = vsel %vm1359_vm2, %v4421_v2, 0.0 }
 0xfea   : > { %2947 = vadd.xlane.f32.xlu0 %v2946_v3 }
 0xff7   : > { %v2640_v4 = vpop.trf.xlu1 }
 0xff8   : > { %v2729_v6 = vpack.c.bf16 %v2640_v4, %v2640_v4 }
 0xff9   : > { %v2608_v5 = vpop.trf.xlu0 }
 0xffa   : > { %v2728_v7 = vpack.c.bf16 %v2608_v5, %v2608_v5  ;;  %v3014_v8 = vsel %vm1595_vm4, %v2729_v6, 0 }
 0xffb   : > { %4216 = vmatpush3.bf16.msra.mxu0 %v3014_v8 }
 0xffc   : > { %v2968_v9 = vsel %vm1595_vm4, %v2728_v7, 0  ;;  %4227 = vmatprep.subr.bf16.mxu0 %v4444_v34 }
 0xffd   : > { %4210 = vmatpush3.bf16.msra.mxu1 %v2968_v9 }
 0xffe   : > { %4221 = vmatprep.subr.bf16.mxu1 %v4444_v34 }
0x1017   : > { %2656 = vxpose.xlu0.b32.start.end [1/1] (short) (narrow) %v4854_v57, 8 }
0x101b   : > { %2688 = vxpose.xlu0.b32.start.end [1/1] (short) (narrow) %v4858_v61, 8 }
0x1067   : > { %v2942_v10 = vpop.xlane.xlu0 %2941 }
0x1068   : > { %4422 = vrcp.f32 %v2942_v10 }
0x106f   : > { %v2945_v11 = vpop.xlane.xlu0 %2944 }
0x1070   : > { %4424 = vrcp.f32 %v2945_v11 }
0x1072   : > { %v4423_v12 = vpop.eup %4422 }
0x1073   : > { %v2956_v13 = vmul.f32 %v4423_v12, %v4415_v50  ;;  %v2951_v57 = vpop.xlane.xlu0 %2950 }
0x1075   : > { %v2960_v14 = vpack.c.bf16 %v2956_v13, %v2956_v13 }
0x1077   : > { %4212 = vmatmul.mubr.msk.bf16.vlgmr.msra.gmra.mrb[52].mxu1 %vm1359_vm2, %v2960_v14  ;;  %v2948_v61 = vpop.xlane.xlu0 %2947 }
0x1078   : > { %4223 = vmatprep.mubr.msk.bf16.mxu1 %vm4445_vm1, %v4444_v34  ;;  %4426 = vrcp.f32 %v2948_v61 }
0x1079   : > { %4428 = vrcp.f32 %v2951_v57 }
0x107a   : > { %v4425_v15 = vpop.eup %4424 }
0x107b   : > { %v2957_v16 = vmul.f32 %v4425_v15, %v4417_v54 }
0x107d   : > { %v2961_v17 = vpack.c.bf16 %v2957_v16, %v2957_v16 }
0x107f   : > { %4218 = vmatmul.mubr.msk.bf16.vlgmr.msra.gmra.mrb[32].mxu0 %vm1359_vm2, %v2961_v17 }
0x1080   : > { %4229 = vmatprep.mubr.msk.bf16.mxu0 %vm4445_vm1, %v4444_v34 }
0x1082   : > { %v4427_v18 = vpop.eup %4426 }
0x1083   : > { %v2958_v21 = vmul.f32 %v4427_v18, %v4421_v2  ;;  %v4429_v22 = vpop.eup %4428 }
0x1084   : > { %v2959_v23 = vmul.f32 %v4429_v22, %v4419_v59 }
0x1085   : > { %v2962_v24 = vpack.c.bf16 %v2958_v21, %v2958_v21 }
0x1086   : > { %v2963_v27 = vpack.c.bf16 %v2959_v23, %v2959_v23 }
0x1097   : > { %v2672_v19 = vpop.trf.xlu0 }
0x1098   : > { %v2730_v63 = vpack.c.bf16 %v2672_v19, %v2672_v19  ;;  %v3906_v19 = vld [vmem:[%s5070_s8 + $0x1] ss:$0 sm:$0xff] }
0x109a   : > { %v3060_v62 = vsel %vm1595_vm4, %v2730_v63, 0 }
0x109b   : > { %4222 = vmatpush3.bf16.msra.mxu1 %v3060_v62  ;;  %v2704_v0 = vpop.trf.xlu0 }
0x109c   : > { %v2731_v1 = vpack.c.bf16 %v2704_v0, %v2704_v0  ;;  %4233 = vmatprep.subr.bf16.mxu1 %v4444_v34 }
0x109e   : > { %v3106_v25 = vsel %vm1595_vm4, %v2731_v1, 0  ;;  %4224 = vmatmul.mubr.msk.bf16.vlgmr.msra.gmra.mrb[56].mxu1 %vm1359_vm2, %v2962_v24 }
0x109f   : > { %4228 = vmatpush3.bf16.msra.mxu0 %v3106_v25  ;;  %4235 = vmatprep.mubr.msk.bf16.mxu1 %vm4445_vm1, %v4444_v34  ;;  %v4374_v25 = vld [vmem:[%s5073_s11 + $0x10] sm:$0xff]  }
0x10a0   : > { %4239 = vmatprep.subr.bf16.mxu0 %v4444_v34  ;;  %4234 = vmatpush3.bf16.msra.mxu1 %v3161_v30 }
0x10a1   : > { %4245 = vmatprep.subr.bf16.mxu1 %v4444_v34 }
0x10a2   : > { %4230 = vmatmul.mubr.msk.bf16.vlgmr.msra.gmra.mrb[36].mxu0 %vm1359_vm2, %v2963_v27 }
0x10a3   : > { %4241 = vmatprep.mubr.msk.bf16.mxu0 %vm4445_vm1, %v4444_v34  ;;  %4240 = vmatpush3.bf16.msra.mxu0 %v3207_v32  ;;  %v3909_v32 = vld [vmem:[%s5071_s9 + $0x1] ss:$0 sm:$0xff] }
0x10a4   : > { %4251 = vmatprep.subr.bf16.mxu0 %v4444_v34 }
0x114a   : > { %v3004_v35 = vpop.f32.mrb[52].mxu1 }
0x114b   : > { %v3148_v36 = vpack.c.bf16 %v3004_v35, %v3004_v35  ;;  %v4213_v37 = vpop.f32.mrb[53].mxu1  ;;  %v3910_v35 = vld [vmem:[%s5072_s10 + $0x1] ss:$0 sm:$0xff] }
0x114c   : > { %v3007_v39 = vpop.f32.mrb[54].mxu1 }
0x114d   : > { %v4214_v40 = vpop.f32.mrb[55].mxu1  ;;  %4236 = vmatmul.mubr.msk.bf16.vlgmr.msra.gmra.mrb[60].mxu1 %vm1359_vm2, %v3148_v36  ;;  %v4376_v39 = vld [vmem:[%s5075_s13 + $0x40] sm:$0xff]  }
0x114e   : > { %4246 = vmatpush3.bf16.msra.mxu1 %v3253_v38  ;;  %4247 = vmatprep.mubr.msk.bf16.mxu1 %vm4445_vm1, %v4444_v34  ;;  %v4377_v40 = vld [vmem:[%s5075_s13 + $0x48] sm:$0xff]  }
0x114f   : > { %4257 = vmatprep.subr.bf16.mxu1 %v4444_v34 }
0x1152   : > { %v3050_v41 = vpop.f32.mrb[32].mxu0 }
0x1153   : > { %v3149_v42 = vpack.c.bf16 %v3050_v41, %v3050_v41  ;;  %v4219_v43 = vpop.f32.mrb[33].mxu0  ;;  %v4379_v41 = vld [vmem:[%s5075_s13 + $0x58] sm:$0xff]  }
0x1154   : > { %v3053_v45 = vpop.f32.mrb[34].mxu0  ;;  %v4381_v43 = vld [vmem:[%s5075_s13 + $0x68] sm:$0xff]  }
0x1155   : > { %v4220_v46 = vpop.f32.mrb[35].mxu0  ;;  %4242 = vmatmul.mubr.msk.bf16.vlgmr.msra.gmra.mrb[40].mxu0 %vm1359_vm2, %v3149_v42  ;;  %v4380_v42 = vld [vmem:[%s5075_s13 + $0x60] sm:$0xff]   ;;  %v4383_v45 = vld [vmem:[%s5075_s13 + $0x78] sm:$0xff]  }
0x1156   : > { %4252 = vmatpush3.bf16.msra.mxu0 %v3299_v44  ;;  %4253 = vmatprep.mubr.msk.bf16.mxu0 %vm4445_vm1, %v4444_v34  ;;  %v4382_v44 = vld [vmem:[%s5075_s13 + $0x70] sm:$0xff]   ;;  %v3916_v46 = vld [vmem:[%s5074_s12 + $0x1] ss:$0 sm:$0xff] }
0x1157   : > { %4265 = vmatprep.subr.bf16.mxu0 %v4444_v34 }
0x1171   : > { %v3096_v47 = vpop.f32.mrb[56].mxu1 }
0x1172   : > { %v3150_v48 = vpack.c.bf16 %v3096_v47, %v3096_v47  ;;  %v4225_v49 = vpop.f32.mrb[57].mxu1 }
0x1173   : > { %v3099_v28 = vpop.f32.mrb[58].mxu1 }
0x1174   : > { %v4226_v50 = vpop.f32.mrb[59].mxu1  ;;  %4248 = vmatmul.mubr.msk.bf16.vlgmr.msra.gmra.mrb[64].mxu1 %vm1359_vm2, %v3150_v48 }
0x1175   : > { %v3142_v51 = vpop.f32.mrb[36].mxu0  ;;  %4261 = vmatprep.mubr.msk.bf16.mxu1 %vm4445_vm1, %v4444_v34  ;;  %4258 = vmatpush3.bf16.msra.mxu1 %v4374_v25  ;;  %v4388_v25 = vld [vmem:[%s5081_s19 + $0x10] sm:$0xff]  }
0x1176   : > { %v3151_v52 = vpack.c.bf16 %v3142_v51, %v3142_v51  ;;  %v4231_v53 = vpop.f32.mrb[37].mxu0  ;;  %4259 = vmatprep.subr.bf16.mxu1 %v4444_v34 }
0x1177   : > { %v3145_v56 = vpop.f32.mrb[38].mxu0 }
0x1178   : > { %v4232_v55 = vpop.f32.mrb[39].mxu0  ;;  %4254 = vmatmul.mubr.msk.bf16.vlgmr.msra.gmra.mrb[44].mxu0 %vm1359_vm2, %v3151_v52 }
0x1179   : > { %4281 = vmatprep.mubr.msk.bf16.mxu0 %vm4445_vm1, %v4444_v34  ;;  %4266 = vmatpush3.bf16.msra.mxu0 %v4376_v39 }
0x117a   : > { %4267 = vmatprep.subr.bf16.mxu0 %v4444_v34 }
0x117d   : > { %4268 = vmatpush3.bf16.msra.mxu0 %v4377_v40 }
0x117e   : > { %4269 = vmatprep.subr.bf16.mxu0 %v4444_v34 }
0x1181   : > { %4270 = vmatpush3.bf16.msra.mxu0 %v4378_v26 }
0x1182   : > { %4271 = vmatprep.subr.bf16.mxu0 %v4444_v34 }
0x1185   : > { %4272 = vmatpush3.bf16.msra.mxu0 %v4379_v41 }
0x1186   : > { %4273 = vmatprep.subr.bf16.mxu0 %v4444_v34 }
0x1189   : > { %4274 = vmatpush3.bf16.msra.mxu0 %v4380_v42 }
0x118a   : > { %4275 = vmatprep.subr.bf16.mxu0 %v4444_v34 }
0x118d   : > { %4276 = vmatpush3.bf16.msra.mxu0 %v4381_v43 }
0x118e   : > { %4277 = vmatprep.subr.bf16.mxu0 %v4444_v34 }
0x1191   : > { %4278 = vmatpush3.bf16.msra.mxu0 %v4382_v44 }
0x1192   : > { %4279 = vmatprep.subr.bf16.mxu0 %v4444_v34 }
0x1195   : > { %4280 = vmatpush3.bf16.msra.mxu0 %v4383_v45 }
0x1220   : > { %v3197_v54 = vpop.f32.mrb[60].mxu1 }
0x1221   : > { %v4237_v58 = vpop.f32.mrb[61].mxu1  ;;  %v3341_v3 = vsel %vm835_vm0, %v3197_v54, 0.0 }
0x1222   : > { %v3200_v59 = vpop.f32.mrb[62].mxu1 }
0x1223   : > { %v4238_v60 = vpop.f32.mrb[63].mxu1 }
0x1228   : > { %v3243_v2 = vpop.f32.mrb[40].mxu0 }
0x1229   : > { %v3342_v4 = vsel %vm835_vm0, %v3243_v2, 0.0  ;;  %v4243_v5 = vpop.f32.mrb[41].mxu0 }
0x122a   : > { %v3343_v6 = vadd.f32 %v3342_v4, %v3341_v3  ;;  %v3246_v7 = vpop.f32.mrb[42].mxu0  ;;  %v3945_v4 = vld [vmem:[%s5076_s14 + $0x1] ss:$0 sm:$0xff] }
0x122b   : > { %v4244_v8 = vpop.f32.mrb[43].mxu0 }
0x1247   : > { %v3289_v9 = vpop.f32.mrb[64].mxu1 }
0x1248   : > { %v3344_v10 = vsel %vm835_vm0, %v3289_v9, 0.0  ;;  %v4249_v11 = vpop.f32.mrb[65].mxu1 }
0x1249   : > { %v3345_v12 = vadd.f32 %v3344_v10, %v3343_v6  ;;  %v3292_v13 = vpop.f32.mrb[66].mxu1 }
0x124a   : > { %v4250_v14 = vpop.f32.mrb[67].mxu1 }
0x124b   : > { %v3335_v15 = vpop.f32.mrb[44].mxu0 }
0x124c   : > { %v3346_v16 = vsel %vm835_vm0, %v3335_v15, 0.0  ;;  %v4255_v17 = vpop.f32.mrb[45].mxu0 }
0x124d   : > { %v3347_v57 = vadd.f32 %v3346_v16, %v3345_v12  ;;  %v3338_v61 = vpop.f32.mrb[46].mxu0  ;;  %v4384_v16 = vld [vmem:[%s5079_s17] sm:$0xff]   ;;  %v4385_v17 = vld [vmem:[%s5079_s17 + $0x8] sm:$0xff]  }
0x124e   : > { %v4256_v18 = vpop.f32.mrb[47].mxu0 }
0x124f   : > { %v3348_v21 = vadd.f32 %v3347_v57, %v4824_v20  ;;  %v4375_v20 = vld [vmem:[%s5073_s11 + $0x18] sm:$0xff]  }
0x1250   : > { %4260 = vmatpush3.bf16.msra.mxu1 %v4375_v20  ;;  %v4389_v20 = vld [vmem:[%s5081_s19 + $0x18] sm:$0xff]  }
0x1251   : > { %v4954_v63 = vadd.f32 %v3906_v19, %v3348_v21  ;;  %4285 = vmatprep.subr.bf16.mxu1 %v4444_v34  ;;  %v3946_v21 = vld [vmem:[%s5077_s15] ss:$0 sm:$0xff] }
0x1253   : > { %v3362_v22 = vsel %vm835_vm0, %v4954_v63, 0.0 }
0x1254   : > { %3363 = vadd.xlane.f32.xlu0 %v3362_v22  ;;  %v3947_v22 = vld [vmem:[%s5078_s16] ss:$0 sm:$0xff] }
0x12e1   : > { %v3364_v62 = vpop.xlane.xlu0 %3363 }
0x12e2   : > { %v3365_v0 = vmul.f32 0.03125, %v3364_v62 }
0x12e4   : > { %v3366_v23 = vsub.f32 %v4954_v63, %v3365_v0 }
0x12e6   : > { %v3367_v1 = vmul.f32 %v3366_v23, %v3366_v23 }
0x12e8   : > { %v3368_v24 = vsel %vm835_vm0, %v3367_v1, 0.0 }
0x12e9   : > { %3369 = vadd.xlane.f32.xlu1 %v3368_v24  ;;  %v4387_v24 = vld [vmem:[%s5081_s19 + $0x8] sm:$0xff]  }
0x1376   : > { %v3370_v27 = vpop.xlane.xlu1 %3369 }
0x1377   : > { %v3371_v29 = vmul.f32 0.03125, %v3370_v27  ;;  %v3948_v27 = vld [vmem:[%s5080_s18] ss:$0 sm:$0xff] }
0x1379   : > { %v3372_v30 = vadd.f32 1e-06, %v3371_v29 }
0x137b   : > { %4430 = vrsqrt.f32 %v3372_v30 }
0x1385   : > { %v4431_v31 = vpop.eup %4430 }
0x1386   : > { %v3374_v33 = vmul.f32 %v4431_v31, %v3366_v23  ;;  %v4386_v23 = vld [vmem:[%s5081_s19] sm:$0xff]  }
0x1388   : > { %v3381_v36 = vmul.f32 %v3909_v32, %v3374_v33 }
0x138a   : > { %v3388_v37 = vadd.f32 %v3910_v35, %v3381_v36 }
0x138c   : > { %v3389_v38 = vpack.c.bf16 %v3388_v37, %v3388_v37 }
0x138e   : > { %4262 = vmatmul.mubr.msk.bf16.vlgmr.msra.gmra.mrb[68].mxu1 %vm835_vm0, %v3389_v38 }
0x138f   : > { %4289 = vmatprep.mubr.msk.bf16.mxu1 %vm4445_vm1, %v4444_v34  ;;  %4286 = vmatpush3.bf16.msra.mxu1 %v4384_v16 }
0x1390   : > { %4287 = vmatprep.subr.bf16.mxu1 %v4444_v34 }
0x1393   : > { %4288 = vmatpush3.bf16.msra.mxu1 %v4385_v17 }
0x1394   : > { %4293 = vmatprep.subr.bf16.mxu1 %v4444_v34 }
0x1461   : > { %v3452_v47 = vpop.f32.mrb[68].mxu1 }
0x1462   : > { %v3453_v48 = vadd.f32 %v3916_v46, %v3452_v47  ;;  %v4263_v49 = vpop.f32.mrb[69].mxu1 }
0x1463   : > { %v3455_v28 = vpop.f32.mrb[70].mxu1 }
0x1464   : > { %v3458_v50 = vmul.f32 %v3453_v48, %v3453_v48  ;;  %v4264_v51 = vpop.f32.mrb[71].mxu1 }
0x1466   : > { %v3459_v52 = vmul.f32 %v3458_v50, %v3453_v48 }
0x1468   : > { %v3460_v53 = vmul.f32 0.044715, %v3459_v52 }
0x146a   : > { %v3461_v56 = vadd.f32 %v3460_v53, %v3453_v48 }
0x146c   : > { %v3462_v55 = vmul.f32 0.7978846, %v3461_v56 }
0x146e   : > { %4432 = vtanh.f32 %v3462_v55 }
0x1478   : > { %v4433_v54 = vpop.eup %4432 }
0x1479   : > { %v3464_v58 = vadd.f32 1.0, %v4433_v54 }
0x147b   : > { %v3465_v59 = vmul.f32 0.5, %v3464_v58 }
0x147d   : > { %v3466_v60 = vmul.f32 %v3465_v59, %v3453_v48 }
0x147f   : > { %v3467_v2 = vpack.c.bf16 %v3466_v60, %v3466_v60 }
0x1481   : > { %4282 = vmatmul.mubr.bf16.vlgmr.msra.gmra.mrb[48].mxu0 %v3467_v2 }
0x1554   : > { %v3567_v3 = vpop.f32.mrb[48].mxu0 }
0x1555   : > { %v3573_v5 = vadd.f32 %v3567_v3, %v4954_v63  ;;  %v4283_v6 = vpop.f32.mrb[49].mxu0 }
0x1556   : > { %v3570_v7 = vpop.f32.mrb[50].mxu0 }
0x1557   : > { %v4284_v8 = vpop.f32.mrb[51].mxu0  ;;  %v3582_v9 = vadd.f32 %v3945_v4, %v3573_v5 }
0x1559   : > { %v3585_v10 = vsel %vm835_vm0, %v3582_v9, 0.0 }
0x155a   : > { %3586 = vadd.xlane.f32.xlu1 %v3585_v10 }
0x15e7   : > { %v3587_v11 = vpop.xlane.xlu1 %3586 }
0x15e8   : > { %v3588_v12 = vmul.f32 0.03125, %v3587_v11 }
0x15ea   : > { %v3589_v13 = vsub.f32 %v3582_v9, %v3588_v12 }
0x15ec   : > { %v3590_v14 = vmul.f32 %v3589_v13, %v3589_v13 }
0x15ee   : > { %v3591_v15 = vsel %vm835_vm0, %v3590_v14, 0.0 }
0x15ef   : > { %3592 = vadd.xlane.f32.xlu1 %v3591_v15 }
0x167c   : > { %v3593_v57 = vpop.xlane.xlu1 %3592 }
0x167d   : > { %v3594_v61 = vmul.f32 0.03125, %v3593_v57 }
0x167f   : > { %v3595_v18 = vadd.f32 1e-06, %v3594_v61 }
0x1681   : > { %4434 = vrsqrt.f32 %v3595_v18 }
0x168b   : > { %v4435_v19 = vpop.eup %4434 }
0x168c   : > { %v3597_v63 = vmul.f32 %v4435_v19, %v3589_v13 }
0x168e   : > { %v3604_v62 = vmul.f32 %v3946_v21, %v3597_v63 }
0x1690   : > { %v3611_v0 = vadd.f32 %v3947_v22, %v3604_v62 }
0x1692   : > { %v3612_v1 = vpack.c.bf16 %v3611_v0, %v3611_v0 }
0x1694   : > { %4290 = vmatmul.mubr.msk.bf16.vlgmr.msra.gmra.mrb[72].mxu1 %vm835_vm0, %v3612_v1 }
0x1695   : > { %4294 = vmatpush3.bf16.msra.mxu1 %v4386_v23  ;;  %4301 = vmatprep.mubr.msk.bf16.mxu1 %vm4445_vm1, %v4444_v34 }
0x1696   : > { %4295 = vmatprep.subr.bf16.mxu1 %v4444_v34 }
0x1699   : > { %4296 = vmatpush3.bf16.msra.mxu1 %v4387_v24 }
0x169a   : > { %4297 = vmatprep.subr.bf16.mxu1 %v4444_v34 }
0x169d   : > { %4298 = vmatpush3.bf16.msra.mxu1 %v4388_v25 }
0x169e   : > { %4299 = vmatprep.subr.bf16.mxu1 %v4444_v34  ;;  %v3952_v34 = vld [vmem:[%s5082_s20] ss:$0 sm:$0xff] }
0x16a1   : > { %4300 = vmatpush3.bf16.msra.mxu1 %v4389_v20 }
0x1767   : > { %v3673_v29 = vpop.f32.mrb[72].mxu1 }
0x1768   : > { %v3674_v30 = vadd.f32 %v3948_v27, %v3673_v29  ;;  %v4291_v31 = vpop.f32.mrb[73].mxu1 }
0x1769   : > { %v3676_v32 = vpop.f32.mrb[74].mxu1 }
0x176a   : > { %v3679_v33 = vmax.f32 %v3674_v30, 0.0  ;;  %v4292_v35 = vpop.f32.mrb[75].mxu1 }
0x176c   : > { %v3680_v36 = vpack.c.bf16 %v3679_v33, %v3679_v33 }
0x176e   : > { %4302 = vmatmul.mubr.msk.bf16.vlgmr.msra.gmra.mrb[76].mxu1 %vm3720_vm5, %v3680_v36 }
0x1841   : > { %v3758_v37 = vpop.f32.mrb[76].mxu1 }
0x1842   : > { %v3759_v38 = vadd.f32 %v3952_v34, %v3758_v37  ;;  %v4303_v39 = vpop.f32.mrb[77].mxu1 }
0x1843   : > { %v3761_v40 = vpop.f32.mrb[78].mxu1 }
0x1844   : > { %3764 = vst [vmem:[%s654_s29] sm:$0xff] %v3759_v38  ;;  %v4304_v26 = vpop.f32.mrb[79].mxu1 }
0x1845 PF: > { %s5102_s1 = sld [smem:[#allocation2_spill]] }
0x184b   : > { %s31_s2 = sadd.s32 1, %s5102_s1  }
0x184c   : > { %p28_p4 = scmp.ge.s32.totalorder %s31_s2, 4  }
0x184e   :  { %30 = sbr.rel (!%p28_p4) target bundleno = 7 (0x7), region = 146 }

</bundles_post_ra>
